<compile_context>
chip_gen: v7x
topology: tpu7x:2x2x1
jax: 0.10.0
libtpu: 0.0.40
codegen_flags: <defaults>
</compile_context>

<pallas_src>
import jax
import jax.numpy as jnp
from jax.experimental import pallas as pl
from jax.experimental.pallas import tpu as pltpu

LN_EPS = 1e-5  # PyTorch nn.LayerNorm default


# ----------------------------- in-kernel helpers -----------------------------

def _layernorm(x, w, b):
    mu = jnp.mean(x, axis=-1, keepdims=True)
    var = jnp.mean(jnp.square(x - mu), axis=-1, keepdims=True)
    return (x - mu) * jax.lax.rsqrt(var + LN_EPS) * w + b


_SQRT_2_OVER_PI = 0.7978845608028654


def _gelu(x):
    # TODO(synk): nn.GELU() is the exact-erf variant; the tanh approximation
    # (max abs deviation ~3e-3) is used so the transcendental sits on the EUP
    # instead of a ~12-op VALU erf polynomial on the largest elementwise tensor.
    return 0.5 * x * (1.0 + jnp.tanh(_SQRT_2_OVER_PI * (x + 0.044715 * x * x * x)))


# --------------------------------- kernel ------------------------------------

def _make_kernel(heads, dim_head, compute_dtype):
    inner = heads * dim_head
    scale = dim_head ** (-0.5)
    f32 = jnp.float32
    cdt = compute_dtype

    def kernel(x_ref, elo_ref,
               ln1w_ref, ln1b_ref, wqkv_ref, weq_ref, wo_ref, bo_ref,
               ln2w_ref, ln2b_ref, w1_ref, b1_ref, w2_ref, b2_ref,
               fnw_ref, fnb_ref,
               o_ref):
        l = pl.program_id(1)
        nl = pl.num_programs(1)
        bt, n, d = x_ref.shape
        m = bt * n

        # Activation carry lives in the resident output block; layer 0 takes the
        # kernel input directly (no o_ref store->load bounce at the start).
        x = jnp.where(l == 0, x_ref[...], o_ref[...]).reshape(m, d)

        # ---------------- EloAwareAttention ----------------
        xn = _layernorm(x, ln1w_ref[0], ln1b_ref[0]).astype(cdt)
        qkv = jnp.dot(xn, wqkv_ref[0], preferred_element_type=f32)        # (M, 3*inner)

        elo = elo_ref[...].reshape(bt, -1).astype(cdt)                    # (Bt, E)
        elo_eff = jnp.dot(elo, weq_ref[0], preferred_element_type=f32)    # (Bt, inner)

        q = (qkv[:, 0 * inner:1 * inner].reshape(bt, n, inner)
             + elo_eff[:, None, :]).astype(cdt)
        k = qkv[:, 1 * inner:2 * inner].reshape(bt, n, inner).astype(cdt)
        v = qkv[:, 2 * inner:3 * inner].reshape(bt, n, inner).astype(cdt)

        # TODO(synk): a fully head-batched (bt*heads, n, dh) einsum would also
        # remove the 64-lane q/k/v slices, but needs a 4-D (b n h d -> b h n d)
        # relayout; kept as an unrolled per-head loop for lowering safety.
        outs = []
        for h in range(heads):
            lo = h * dim_head
            qh = q[:, :, lo:lo + dim_head]
            kh = k[:, :, lo:lo + dim_head]
            vh = v[:, :, lo:lo + dim_head]
            s = jnp.einsum('bnd,bmd->bnm', qh, kh,
                           preferred_element_type=f32) * scale            # (Bt, N, N)
            s = s - jnp.max(s, axis=-1, keepdims=True)
            e = jnp.exp(s)
            p = e * pl.reciprocal(jnp.sum(e, axis=-1, keepdims=True), approx=True)
            outs.append(jnp.einsum('bnm,bmd->bnd', p.astype(cdt), vh,
                                   preferred_element_type=f32))           # (Bt, N, dh)

        # Concatenate heads once -> single full-K (K = inner) output projection.
        attn_out = jnp.concatenate(outs, axis=-1).reshape(m, inner).astype(cdt)
        x = x + jnp.dot(attn_out, wo_ref[0], preferred_element_type=f32) + bo_ref[0]

        # ---------------- FeedForward ----------------
        xn2 = _layernorm(x, ln2w_ref[0], ln2b_ref[0]).astype(cdt)
        hdn = _gelu(jnp.dot(xn2, w1_ref[0], preferred_element_type=f32) + b1_ref[0])
        x = x + jnp.dot(hdn.astype(cdt), w2_ref[0], preferred_element_type=f32) + b2_ref[0]

        # Write back the carry; last layer applies the final LayerNorm.
        @pl.when(l < nl - 1)
        def _():
            o_ref[...] = x.reshape(bt, n, d)

        @pl.when(l == nl - 1)
        def _():
            o_ref[...] = _layernorm(x, fnw_ref[...], fnb_ref[...]).reshape(bt, n, d)

    return kernel


# ------------------------------ python wrapper --------------------------------

def _vmem_limit_bytes():
    """Generation-aware scoped-VMEM limit (v7x: 64 MiB physical; v5e/v6e: 128 MiB)."""
    cap = None
    try:
        cap = getattr(pltpu.get_tpu_info(), "vmem_capacity_bytes", None)
    except Exception:
        cap = None
    if not cap:
        cap = 64 * 1024 * 1024            # conservative default (v7x per-core size)
    return int(max(min(cap - 16 * 1024 * 1024, 100 * 1024 * 1024), 32 * 1024 * 1024))


def _pick_batch_tile(batch, seq, dim, inner, mlp_dim, elo_dim, heads,
                     weight_bytes, vmem_limit, requested=None):
    """Largest divisor of `batch` whose VMEM footprint fits, with M = bt*seq <= 1024."""
    if requested is not None and batch % requested == 0:
        return requested

    budget = max(int(0.7 * vmem_limit) - 2 * weight_bytes, 256 * 1024)

    def act_bytes(bt):
        m = bt * seq
        b = 4 * m * (2 * dim + 4 * inner + mlp_dim)        # x/carry, qkv, attn_out, hidden
        b += 4 * bt * heads * seq * seq * 2                # scores + probs
        b += 2 * 4 * (2 * bt * seq * dim + bt * elo_dim)   # double-buffered in/out blocks
        return b

    best = 1
    for bt in range(1, batch + 1):
        if batch % bt:
            continue
        if bt > 1 and bt * seq > 1024:
            break
        if act_bytes(bt) > budget:
            break
        best = bt

    # Prefer >=2 batch tiles (v7x megacore sharding) if M stays MXU-sized.
    if best == batch and batch > 1:
        for bt in range(batch // 2, 0, -1):
            if batch % bt == 0 and act_bytes(bt) <= budget and bt * seq >= 128:
                return bt
    return best


def prepare_params(params, compute_dtype=jnp.bfloat16):
    """One-time cast of the big matmul weights to the MXU compute dtype.

    Do this once at parameter-load time, NOT per forward call, to avoid an extra
    HBM read+write convert pass over every weight on each call.
    """
    out = dict(params)
    for name in ("w_qkv", "w_eq", "w_o", "w_ff1", "w_ff2"):
        out[name] = params[name].astype(compute_dtype)
    return out


def transformer_forward(params, x, elo_emb, *, heads, dim_head,
                        compute_dtype=jnp.bfloat16, batch_tile=None):
    """Transformer.forward(x, elo_emb): x (B, N, D) f32, elo_emb (B, elo_dim) f32."""
    B, N, D = x.shape
    E = elo_emb.shape[-1]
    L = params["w_qkv"].shape[0]
    inner = heads * dim_head
    mlp_dim = params["w_ff1"].shape[-1]
    cdt = compute_dtype

    def as_cdt(a):                         # no-op when params came from prepare_params
        return a if a.dtype == cdt else a.astype(cdt)

    w_qkv, w_eq, w_o = as_cdt(params["w_qkv"]), as_cdt(params["w_eq"]), as_cdt(params["w_o"])
    w_ff1, w_ff2 = as_cdt(params["w_ff1"]), as_cdt(params["w_ff2"])

    vmem_limit = _vmem_limit_bytes()
    itemsize = jnp.dtype(cdt).itemsize
    weight_bytes = itemsize * (D * 3 * inner + E * inner + inner * D
                               + D * mlp_dim + mlp_dim * D)
    weight_bytes += 4 * (6 * D + mlp_dim)          # f32 LN params + biases per layer
    bt = _pick_batch_tile(B, N, D, inner, mlp_dim, E, heads,
                          weight_bytes, vmem_limit, requested=batch_tile)
    nb = B // bt

    elo3 = elo_emb.reshape(B, 1, E).astype(jnp.float32)

    def stacked(a):   # (L, d1, d2): one layer slice per grid step along the layer axis
        return pl.BlockSpec((1,) + a.shape[1:], lambda b, l: (l, 0, 0))

    in_specs = [
        pl.BlockSpec((bt, N, D), lambda b, l: (b, 0, 0)),   # x (consumed at l==0)
        pl.BlockSpec((bt, 1, E), lambda b, l: (b, 0, 0)),   # elo_emb per batch tile
        stacked(params["ln1_w"]), stacked(params["ln1_b"]),
        stacked(w_qkv), stacked(w_eq), stacked(w_o), stacked(params["b_o"]),
        stacked(params["ln2_w"]), stacked(params["ln2_b"]),
        stacked(w_ff1), stacked(params["b_ff1"]),
        stacked(w_ff2), stacked(params["b_ff2"]),
        pl.BlockSpec((1, D), lambda b, l: (0, 0)),          # final norm w
        pl.BlockSpec((1, D), lambda b, l: (0, 0)),          # final norm b
    ]

    kernel = _make_kernel(heads, dim_head, cdt)

    return pl.pallas_call(
        kernel,
        out_shape=jax.ShapeDtypeStruct((B, N, D), jnp.float32),
        grid=(nb, L),
        in_specs=in_specs,
        out_specs=pl.BlockSpec((bt, N, D), lambda b, l: (b, 0, 0)),
        compiler_params=pltpu.CompilerParams(
            dimension_semantics=("parallel", "arbitrary"),
            vmem_limit_bytes=vmem_limit),
    )(x.astype(jnp.float32), elo3,
      params["ln1_w"], params["ln1_b"], w_qkv, w_eq, w_o, params["b_o"],
      params["ln2_w"], params["ln2_b"], w_ff1, params["b_ff1"],
      w_ff2, params["b_ff2"], params["norm_w"], params["norm_b"])


# ------------------------------ parameter init --------------------------------

def init_params(key, *, dim, depth, heads, dim_head, mlp_dim, elo_dim):
    # TODO(synk): the heads==1 and dim_head==dim (to_out = nn.Identity) variant
    # is not implemented; this always uses the projecting to_out Linear.
    inner = heads * dim_head
    f32 = jnp.float32
    ks = iter(jax.random.split(key, 5 * depth))

    def w(shape):
        return jax.random.normal(next(ks), shape, f32) * 0.02

    return dict(
        ln1_w=jnp.ones((depth, 1, dim), f32), ln1_b=jnp.zeros((depth, 1, dim), f32),
        w_qkv=jnp.stack([w((dim, 3 * inner)) for _ in range(depth)]),
        w_eq=jnp.stack([w((elo_dim, inner)) for _ in range(depth)]),
        w_o=jnp.stack([w((inner, dim)) for _ in range(depth)]),
        b_o=jnp.zeros((depth, 1, dim), f32),
        ln2_w=jnp.ones((depth, 1, dim), f32), ln2_b=jnp.zeros((depth, 1, dim), f32),
        w_ff1=jnp.stack([w((dim, mlp_dim)) for _ in range(depth)]),
        b_ff1=jnp.zeros((depth, 1, mlp_dim), f32),
        w_ff2=jnp.stack([w((mlp_dim, dim)) for _ in range(depth)]),
        b_ff2=jnp.zeros((depth, 1, dim), f32),
        norm_w=jnp.ones((1, dim), f32), norm_b=jnp.zeros((1, dim), f32),
    )


# -------------------------- pure-JAX reference (f32) ---------------------------

def reference_forward(params, x, elo_emb, *, heads, dim_head):
    inner = heads * dim_head
    scale = dim_head ** (-0.5)
    B, N, D = x.shape
    depth = params["w_qkv"].shape[0]

    def ln(v, w, b):
        mu = v.mean(-1, keepdims=True)
        var = ((v - mu) ** 2).mean(-1, keepdims=True)
        return (v - mu) / jnp.sqrt(var + LN_EPS) * w + b

    for l in range(depth):
        xn = ln(x, params["ln1_w"][l, 0], params["ln1_b"][l, 0])
        qkv = xn @ params["w_qkv"][l]
        q, k, v = jnp.split(qkv, 3, axis=-1)
        q = q + (elo_emb @ params["w_eq"][l])[:, None, :]
        q = q.reshape(B, N, heads, dim_head).transpose(0, 2, 1, 3)
        k = k.reshape(B, N, heads, dim_head).transpose(0, 2, 1, 3)
        v = v.reshape(B, N, heads, dim_head).transpose(0, 2, 1, 3)
        dots = jnp.einsum('bhnd,bhmd->bhnm', q, k) * scale
        attn = jax.nn.softmax(dots, axis=-1)
        out = jnp.einsum('bhnm,bhmd->bhnd', attn, v)
        out = out.transpose(0, 2, 1, 3).reshape(B, N, inner)
        x = x + out @ params["w_o"][l] + params["b_o"][l, 0]
        xn2 = ln(x, params["ln2_w"][l, 0], params["ln2_b"][l, 0])
        h = jax.nn.gelu(xn2 @ params["w_ff1"][l] + params["b_ff1"][l, 0],
                        approximate=False)
        x = x + h @ params["w_ff2"][l] + params["b_ff2"][l, 0]
    return ln(x, params["norm_w"][0], params["norm_b"][0])


# ----------------------------------- main --------------------------------------

if __name__ == "__main__":
    dim, depth, heads, dim_head, mlp_dim, elo_dim = 128, 2, 4, 64, 128, 64
    B, N = 2, 8

    key = jax.random.PRNGKey(0)
    kp, kx, ke = jax.random.split(key, 3)

    params = init_params(kp, dim=dim, depth=depth, heads=heads,
                         dim_head=dim_head, mlp_dim=mlp_dim, elo_dim=elo_dim)
    x = jax.random.normal(kx, (B, N, dim), jnp.float32)
    elo_emb = jax.random.normal(ke, (B, elo_dim), jnp.float32)

    prepared = prepare_params(params, jnp.bfloat16)   # one-time bf16 weight cast

    out = transformer_forward(prepared, x, elo_emb, heads=heads, dim_head=dim_head)
    out = jax.block_until_ready(out)

    assert out.shape == (B, N, dim)
    assert bool(jnp.all(jnp.isfinite(out)))

    ref = reference_forward(params, x, elo_emb, heads=heads, dim_head=dim_head)
    max_err = float(jnp.max(jnp.abs(out - ref)))
    assert max_err < 5e-2, f"mismatch vs f32 reference: max abs err {max_err}"

    print("KERNEL_OK")
</pallas_src>

<mosaic_0001>
module attributes {stable_mosaic.version = 11 : i64} {
  func.func @kernel(%arg0: i32, %arg1: i32, %arg2: memref<2x8x128xf32, #tpu.memory_space<vmem>>, %arg3: memref<2x1x64xf32, #tpu.memory_space<vmem>>, %arg4: memref<1x1x128xf32, #tpu.memory_space<vmem>>, %arg5: memref<1x1x128xf32, #tpu.memory_space<vmem>>, %arg6: memref<1x128x768xbf16, #tpu.memory_space<vmem>>, %arg7: memref<1x64x256xbf16, #tpu.memory_space<vmem>>, %arg8: memref<1x256x128xbf16, #tpu.memory_space<vmem>>, %arg9: memref<1x1x128xf32, #tpu.memory_space<vmem>>, %arg10: memref<1x1x128xf32, #tpu.memory_space<vmem>>, %arg11: memref<1x1x128xf32, #tpu.memory_space<vmem>>, %arg12: memref<1x128x128xbf16, #tpu.memory_space<vmem>>, %arg13: memref<1x1x128xf32, #tpu.memory_space<vmem>>, %arg14: memref<1x128x128xbf16, #tpu.memory_space<vmem>>, %arg15: memref<1x1x128xf32, #tpu.memory_space<vmem>>, %arg16: memref<1x128xf32, #tpu.memory_space<vmem>>, %arg17: memref<1x128xf32, #tpu.memory_space<vmem>>, %arg18: memref<2x8x128xf32, #tpu.memory_space<vmem>>) attributes {dimension_semantics = [#tpu.dimension_semantics<parallel>, #tpu.dimension_semantics<arbitrary>], iteration_bounds = array<i64: 1, 2>, scalar_prefetch = 0 : i64, scratch_operands = 0 : i64, tpu.core_type = #tpu.core_type<tc>, window_params = [{transform_indices = @transform_0, window_bounds = array<i64: 2, 8, 128>}, {transform_indices = @transform_1, window_bounds = array<i64: 2, 1, 64>}, {transform_indices = @transform_2, window_bounds = array<i64: 1, 1, 128>}, {transform_indices = @transform_3, window_bounds = array<i64: 1, 1, 128>}, {transform_indices = @transform_4, window_bounds = array<i64: 1, 128, 768>}, {transform_indices = @transform_5, window_bounds = array<i64: 1, 64, 256>}, {transform_indices = @transform_6, window_bounds = array<i64: 1, 256, 128>}, {transform_indices = @transform_7, window_bounds = array<i64: 1, 1, 128>}, {transform_indices = @transform_8, window_bounds = array<i64: 1, 1, 128>}, {transform_indices = @transform_9, window_bounds = array<i64: 1, 1, 128>}, {transform_indices = @transform_10, window_bounds = array<i64: 1, 128, 128>}, {transform_indices = @transform_11, window_bounds = array<i64: 1, 1, 128>}, {transform_indices = @transform_12, window_bounds = array<i64: 1, 128, 128>}, {transform_indices = @transform_13, window_bounds = array<i64: 1, 1, 128>}, {pipeline_mode = #tpu.pipeline_mode<synchronous>, transform_indices = @transform_14, window_bounds = array<i64: 1, 128>}, {pipeline_mode = #tpu.pipeline_mode<synchronous>, transform_indices = @transform_15, window_bounds = array<i64: 1, 128>}, {transform_indices = @transform_16, window_bounds = array<i64: 2, 8, 128>}]} {
    %c0_i32 = arith.constant 0 : i32
    %0 = arith.cmpi eq, %arg1, %c0_i32 : i32
    %c0 = arith.constant 0 : index
    %c0_0 = arith.constant 0 : index
    %c0_1 = arith.constant 0 : index
    %1 = vector.load %arg2[%c0, %c0_0, %c0_1] : memref<2x8x128xf32, #tpu.memory_space<vmem>>, vector<2x8x128xf32>
    %c0_2 = arith.constant 0 : index
    %c0_3 = arith.constant 0 : index
    %c0_4 = arith.constant 0 : index
    %2 = vector.load %arg18[%c0_2, %c0_3, %c0_4] : memref<2x8x128xf32, #tpu.memory_space<vmem>>, vector<2x8x128xf32>
    %3 = arith.select %0, %1, %2 : vector<2x8x128xf32>
    %4 = vector.shape_cast %3 : vector<2x8x128xf32> to vector<16x128xf32>
    %c0_5 = arith.constant 0 : index
    %c0_6 = arith.constant 0 : index
    %c0_7 = arith.constant 0 : index
    %5 = vector.load %arg4[%c0_5, %c0_6, %c0_7] : memref<1x1x128xf32, #tpu.memory_space<vmem>>, vector<1x1x128xf32>
    %6 = vector.shape_cast %5 : vector<1x1x128xf32> to vector<1x128xf32>
    %c0_8 = arith.constant 0 : index
    %c0_9 = arith.constant 0 : index
    %c0_10 = arith.constant 0 : index
    %7 = vector.load %arg5[%c0_8, %c0_9, %c0_10] : memref<1x1x128xf32, #tpu.memory_space<vmem>>, vector<1x1x128xf32>
    %8 = vector.shape_cast %7 : vector<1x1x128xf32> to vector<1x128xf32>
    %cst = arith.constant dense<0.000000e+00> : vector<16xf32>
    %9 = vector.multi_reduction <add>, %4, %cst [1] : vector<16x128xf32> to vector<16xf32>
    %10 = vector.shape_cast %9 : vector<16xf32> to vector<16x1xf32>
    %cst_11 = arith.constant 1.280000e+02 : f32
    %11 = vector.broadcast %cst_11 : f32 to vector<16x1xf32>
    %12 = arith.divf %10, %11 : vector<16x1xf32>
    %13 = vector.broadcast %12 : vector<16x1xf32> to vector<16x128xf32>
    %14 = arith.subf %4, %13 : vector<16x128xf32>
    %15 = arith.mulf %14, %14 : vector<16x128xf32>
    %cst_12 = arith.constant dense<0.000000e+00> : vector<16xf32>
    %16 = vector.multi_reduction <add>, %15, %cst_12 [1] : vector<16x128xf32> to vector<16xf32>
    %17 = vector.shape_cast %16 : vector<16xf32> to vector<16x1xf32>
    %cst_13 = arith.constant 1.280000e+02 : f32
    %18 = vector.broadcast %cst_13 : f32 to vector<16x1xf32>
    %19 = arith.divf %17, %18 : vector<16x1xf32>
    %20 = vector.broadcast %12 : vector<16x1xf32> to vector<16x128xf32>
    %21 = arith.subf %4, %20 : vector<16x128xf32>
    %cst_14 = arith.constant 9.99999974E-6 : f32
    %22 = vector.broadcast %cst_14 : f32 to vector<16x1xf32>
    %23 = arith.addf %19, %22 : vector<16x1xf32>
    %24 = math.rsqrt %23 : vector<16x1xf32>
    %25 = vector.broadcast %24 : vector<16x1xf32> to vector<16x128xf32>
    %26 = arith.mulf %21, %25 : vector<16x128xf32>
    %27 = vector.broadcast %6 : vector<1x128xf32> to vector<16x128xf32>
    %28 = arith.mulf %26, %27 : vector<16x128xf32>
    %29 = vector.broadcast %8 : vector<1x128xf32> to vector<16x128xf32>
    %30 = arith.addf %28, %29 : vector<16x128xf32>
    %31 = arith.truncf %30 : vector<16x128xf32> to vector<16x128xbf16>
    %c0_15 = arith.constant 0 : index
    %c0_16 = arith.constant 0 : index
    %c0_17 = arith.constant 0 : index
    %32 = vector.load %arg6[%c0_15, %c0_16, %c0_17] : memref<1x128x768xbf16, #tpu.memory_space<vmem>>, vector<1x128x768xbf16>
    %33 = vector.shape_cast %32 : vector<1x128x768xbf16> to vector<128x768xbf16>
    %cst_18 = arith.constant dense<0.000000e+00> : vector<16x768xf32>
    %34 = tpu.matmul %31, %33, %cst_18 {dimension_numbers = #tpu.dot_dimension_numbers<[1], [0], [0], [1], [0, 0, 1, 1], [], []>} : vector<16x128xbf16>, vector<128x768xbf16>, vector<16x768xf32> -> vector<16x768xf32>
    %c0_19 = arith.constant 0 : index
    %c0_20 = arith.constant 0 : index
    %c0_21 = arith.constant 0 : index
    %35 = vector.load %arg3[%c0_19, %c0_20, %c0_21] : memref<2x1x64xf32, #tpu.memory_space<vmem>>, vector<2x1x64xf32>
    %36 = vector.shape_cast %35 : vector<2x1x64xf32> to vector<2x64xf32>
    %37 = arith.truncf %36 : vector<2x64xf32> to vector<2x64xbf16>
    %c0_22 = arith.constant 0 : index
    %c0_23 = arith.constant 0 : index
    %c0_24 = arith.constant 0 : index
    %38 = vector.load %arg7[%c0_22, %c0_23, %c0_24] : memref<1x64x256xbf16, #tpu.memory_space<vmem>>, vector<1x64x256xbf16>
    %39 = vector.shape_cast %38 : vector<1x64x256xbf16> to vector<64x256xbf16>
    %cst_25 = arith.constant dense<0.000000e+00> : vector<2x256xf32>
    %40 = tpu.matmul %37, %39, %cst_25 {dimension_numbers = #tpu.dot_dimension_numbers<[1], [0], [0], [1], [0, 0, 1, 1], [], []>} : vector<2x64xbf16>, vector<64x256xbf16>, vector<2x256xf32> -> vector<2x256xf32>
    %41 = vector.extract_strided_slice %34 {offsets = [0, 0], sizes = [16, 256], strides = [1, 1]} : vector<16x768xf32> to vector<16x256xf32>
    %42 = vector.shape_cast %41 : vector<16x256xf32> to vector<2x8x256xf32>
    %43 = vector.shape_cast %40 : vector<2x256xf32> to vector<2x1x256xf32>
    %44 = vector.broadcast %43 : vector<2x1x256xf32> to vector<2x8x256xf32>
    %45 = arith.addf %42, %44 : vector<2x8x256xf32>
    %46 = arith.truncf %45 : vector<2x8x256xf32> to vector<2x8x256xbf16>
    %47 = vector.extract_strided_slice %34 {offsets = [0, 256], sizes = [16, 256], strides = [1, 1]} : vector<16x768xf32> to vector<16x256xf32>
    %48 = vector.shape_cast %47 : vector<16x256xf32> to vector<2x8x256xf32>
    %49 = arith.truncf %48 : vector<2x8x256xf32> to vector<2x8x256xbf16>
    %50 = vector.extract_strided_slice %34 {offsets = [0, 512], sizes = [16, 256], strides = [1, 1]} : vector<16x768xf32> to vector<16x256xf32>
    %51 = vector.shape_cast %50 : vector<16x256xf32> to vector<2x8x256xf32>
    %52 = arith.truncf %51 : vector<2x8x256xf32> to vector<2x8x256xbf16>
    %53 = vector.extract_strided_slice %46 {offsets = [0, 0, 0], sizes = [2, 8, 64], strides = [1, 1, 1]} : vector<2x8x256xbf16> to vector<2x8x64xbf16>
    %54 = vector.extract_strided_slice %49 {offsets = [0, 0, 0], sizes = [2, 8, 64], strides = [1, 1, 1]} : vector<2x8x256xbf16> to vector<2x8x64xbf16>
    %55 = vector.extract_strided_slice %52 {offsets = [0, 0, 0], sizes = [2, 8, 64], strides = [1, 1, 1]} : vector<2x8x256xbf16> to vector<2x8x64xbf16>
    "tpu.trace_start"() <{level = 10 : i32, message = "bnd,bmd->bnm"}> : () -> ()
    %cst_26 = arith.constant dense<0.000000e+00> : vector<2x8x8xf32>
    %56 = tpu.matmul %53, %54, %cst_26 {dimension_numbers = #tpu.dot_dimension_numbers<[2], [2], [1], [1], [0, 0, 0, 1, 1, 1], [0], [0]>} : vector<2x8x64xbf16>, vector<2x8x64xbf16>, vector<2x8x8xf32> -> vector<2x8x8xf32>
    "tpu.trace_stop"() : () -> ()
    %cst_27 = arith.constant 1.250000e-01 : f32
    %57 = vector.broadcast %cst_27 : f32 to vector<2x8x8xf32>
    %58 = arith.mulf %56, %57 : vector<2x8x8xf32>
    %cst_28 = arith.constant dense<0xFF800000> : vector<2x8xf32>
    %59 = vector.multi_reduction <maximumf>, %58, %cst_28 [2] : vector<2x8x8xf32> to vector<2x8xf32>
    %60 = vector.shape_cast %59 : vector<2x8xf32> to vector<2x8x1xf32>
    %61 = vector.broadcast %60 : vector<2x8x1xf32> to vector<2x8x8xf32>
    %62 = arith.subf %58, %61 : vector<2x8x8xf32>
    %63 = math.exp %62 : vector<2x8x8xf32>
    %cst_29 = arith.constant dense<0.000000e+00> : vector<2x8xf32>
    %64 = vector.multi_reduction <add>, %63, %cst_29 [2] : vector<2x8x8xf32> to vector<2x8xf32>
    %65 = vector.shape_cast %64 : vector<2x8xf32> to vector<2x8x1xf32>
    %66 = tpu.reciprocal %65 {approx = true} : vector<2x8x1xf32> -> vector<2x8x1xf32>
    %67 = vector.broadcast %66 : vector<2x8x1xf32> to vector<2x8x8xf32>
    %68 = arith.mulf %63, %67 : vector<2x8x8xf32>
    %69 = arith.truncf %68 : vector<2x8x8xf32> to vector<2x8x8xbf16>
    "tpu.trace_start"() <{level = 10 : i32, message = "bnm,bmd->bnd"}> : () -> ()
    %cst_30 = arith.constant dense<0.000000e+00> : vector<2x8x64xf32>
    %70 = tpu.matmul %69, %55, %cst_30 {dimension_numbers = #tpu.dot_dimension_numbers<[2], [1], [1], [2], [0, 0, 0, 1, 1, 2], [0], [0]>} : vector<2x8x8xbf16>, vector<2x8x64xbf16>, vector<2x8x64xf32> -> vector<2x8x64xf32>
    "tpu.trace_stop"() : () -> ()
    %71 = vector.extract_strided_slice %46 {offsets = [0, 0, 64], sizes = [2, 8, 64], strides = [1, 1, 1]} : vector<2x8x256xbf16> to vector<2x8x64xbf16>
    %72 = vector.extract_strided_slice %49 {offsets = [0, 0, 64], sizes = [2, 8, 64], strides = [1, 1, 1]} : vector<2x8x256xbf16> to vector<2x8x64xbf16>
    %73 = vector.extract_strided_slice %52 {offsets = [0, 0, 64], sizes = [2, 8, 64], strides = [1, 1, 1]} : vector<2x8x256xbf16> to vector<2x8x64xbf16>
    "tpu.trace_start"() <{level = 10 : i32, message = "bnd,bmd->bnm"}> : () -> ()
    %cst_31 = arith.constant dense<0.000000e+00> : vector<2x8x8xf32>
    %74 = tpu.matmul %71, %72, %cst_31 {dimension_numbers = #tpu.dot_dimension_numbers<[2], [2], [1], [1], [0, 0, 0, 1, 1, 1], [0], [0]>} : vector<2x8x64xbf16>, vector<2x8x64xbf16>, vector<2x8x8xf32> -> vector<2x8x8xf32>
    "tpu.trace_stop"() : () -> ()
    %cst_32 = arith.constant 1.250000e-01 : f32
    %75 = vector.broadcast %cst_32 : f32 to vector<2x8x8xf32>
    %76 = arith.mulf %74, %75 : vector<2x8x8xf32>
    %cst_33 = arith.constant dense<0xFF800000> : vector<2x8xf32>
    %77 = vector.multi_reduction <maximumf>, %76, %cst_33 [2] : vector<2x8x8xf32> to vector<2x8xf32>
    %78 = vector.shape_cast %77 : vector<2x8xf32> to vector<2x8x1xf32>
    %79 = vector.broadcast %78 : vector<2x8x1xf32> to vector<2x8x8xf32>
    %80 = arith.subf %76, %79 : vector<2x8x8xf32>
    %81 = math.exp %80 : vector<2x8x8xf32>
    %cst_34 = arith.constant dense<0.000000e+00> : vector<2x8xf32>
    %82 = vector.multi_reduction <add>, %81, %cst_34 [2] : vector<2x8x8xf32> to vector<2x8xf32>
    %83 = vector.shape_cast %82 : vector<2x8xf32> to vector<2x8x1xf32>
    %84 = tpu.reciprocal %83 {approx = true} : vector<2x8x1xf32> -> vector<2x8x1xf32>
    %85 = vector.broadcast %84 : vector<2x8x1xf32> to vector<2x8x8xf32>
    %86 = arith.mulf %81, %85 : vector<2x8x8xf32>
    %87 = arith.truncf %86 : vector<2x8x8xf32> to vector<2x8x8xbf16>
    "tpu.trace_start"() <{level = 10 : i32, message = "bnm,bmd->bnd"}> : () -> ()
    %cst_35 = arith.constant dense<0.000000e+00> : vector<2x8x64xf32>
    %88 = tpu.matmul %87, %73, %cst_35 {dimension_numbers = #tpu.dot_dimension_numbers<[2], [1], [1], [2], [0, 0, 0, 1, 1, 2], [0], [0]>} : vector<2x8x8xbf16>, vector<2x8x64xbf16>, vector<2x8x64xf32> -> vector<2x8x64xf32>
    "tpu.trace_stop"() : () -> ()
    %89 = vector.extract_strided_slice %46 {offsets = [0, 0, 128], sizes = [2, 8, 64], strides = [1, 1, 1]} : vector<2x8x256xbf16> to vector<2x8x64xbf16>
    %90 = vector.extract_strided_slice %49 {offsets = [0, 0, 128], sizes = [2, 8, 64], strides = [1, 1, 1]} : vector<2x8x256xbf16> to vector<2x8x64xbf16>
    %91 = vector.extract_strided_slice %52 {offsets = [0, 0, 128], sizes = [2, 8, 64], strides = [1, 1, 1]} : vector<2x8x256xbf16> to vector<2x8x64xbf16>
    "tpu.trace_start"() <{level = 10 : i32, message = "bnd,bmd->bnm"}> : () -> ()
    %cst_36 = arith.constant dense<0.000000e+00> : vector<2x8x8xf32>
    %92 = tpu.matmul %89, %90, %cst_36 {dimension_numbers = #tpu.dot_dimension_numbers<[2], [2], [1], [1], [0, 0, 0, 1, 1, 1], [0], [0]>} : vector<2x8x64xbf16>, vector<2x8x64xbf16>, vector<2x8x8xf32> -> vector<2x8x8xf32>
    "tpu.trace_stop"() : () -> ()
    %cst_37 = arith.constant 1.250000e-01 : f32
    %93 = vector.broadcast %cst_37 : f32 to vector<2x8x8xf32>
    %94 = arith.mulf %92, %93 : vector<2x8x8xf32>
    %cst_38 = arith.constant dense<0xFF800000> : vector<2x8xf32>
    %95 = vector.multi_reduction <maximumf>, %94, %cst_38 [2] : vector<2x8x8xf32> to vector<2x8xf32>
    %96 = vector.shape_cast %95 : vector<2x8xf32> to vector<2x8x1xf32>
    %97 = vector.broadcast %96 : vector<2x8x1xf32> to vector<2x8x8xf32>
    %98 = arith.subf %94, %97 : vector<2x8x8xf32>
    %99 = math.exp %98 : vector<2x8x8xf32>
    %cst_39 = arith.constant dense<0.000000e+00> : vector<2x8xf32>
    %100 = vector.multi_reduction <add>, %99, %cst_39 [2] : vector<2x8x8xf32> to vector<2x8xf32>
    %101 = vector.shape_cast %100 : vector<2x8xf32> to vector<2x8x1xf32>
    %102 = tpu.reciprocal %101 {approx = true} : vector<2x8x1xf32> -> vector<2x8x1xf32>
    %103 = vector.broadcast %102 : vector<2x8x1xf32> to vector<2x8x8xf32>
    %104 = arith.mulf %99, %103 : vector<2x8x8xf32>
    %105 = arith.truncf %104 : vector<2x8x8xf32> to vector<2x8x8xbf16>
    "tpu.trace_start"() <{level = 10 : i32, message = "bnm,bmd->bnd"}> : () -> ()
    %cst_40 = arith.constant dense<0.000000e+00> : vector<2x8x64xf32>
    %106 = tpu.matmul %105, %91, %cst_40 {dimension_numbers = #tpu.dot_dimension_numbers<[2], [1], [1], [2], [0, 0, 0, 1, 1, 2], [0], [0]>} : vector<2x8x8xbf16>, vector<2x8x64xbf16>, vector<2x8x64xf32> -> vector<2x8x64xf32>
    "tpu.trace_stop"() : () -> ()
    %107 = vector.extract_strided_slice %46 {offsets = [0, 0, 192], sizes = [2, 8, 64], strides = [1, 1, 1]} : vector<2x8x256xbf16> to vector<2x8x64xbf16>
    %108 = vector.extract_strided_slice %49 {offsets = [0, 0, 192], sizes = [2, 8, 64], strides = [1, 1, 1]} : vector<2x8x256xbf16> to vector<2x8x64xbf16>
    %109 = vector.extract_strided_slice %52 {offsets = [0, 0, 192], sizes = [2, 8, 64], strides = [1, 1, 1]} : vector<2x8x256xbf16> to vector<2x8x64xbf16>
    "tpu.trace_start"() <{level = 10 : i32, message = "bnd,bmd->bnm"}> : () -> ()
    %cst_41 = arith.constant dense<0.000000e+00> : vector<2x8x8xf32>
    %110 = tpu.matmul %107, %108, %cst_41 {dimension_numbers = #tpu.dot_dimension_numbers<[2], [2], [1], [1], [0, 0, 0, 1, 1, 1], [0], [0]>} : vector<2x8x64xbf16>, vector<2x8x64xbf16>, vector<2x8x8xf32> -> vector<2x8x8xf32>
    "tpu.trace_stop"() : () -> ()
    %cst_42 = arith.constant 1.250000e-01 : f32
    %111 = vector.broadcast %cst_42 : f32 to vector<2x8x8xf32>
    %112 = arith.mulf %110, %111 : vector<2x8x8xf32>
    %cst_43 = arith.constant dense<0xFF800000> : vector<2x8xf32>
    %113 = vector.multi_reduction <maximumf>, %112, %cst_43 [2] : vector<2x8x8xf32> to vector<2x8xf32>
    %114 = vector.shape_cast %113 : vector<2x8xf32> to vector<2x8x1xf32>
    %115 = vector.broadcast %114 : vector<2x8x1xf32> to vector<2x8x8xf32>
    %116 = arith.subf %112, %115 : vector<2x8x8xf32>
    %117 = math.exp %116 : vector<2x8x8xf32>
    %cst_44 = arith.constant dense<0.000000e+00> : vector<2x8xf32>
    %118 = vector.multi_reduction <add>, %117, %cst_44 [2] : vector<2x8x8xf32> to vector<2x8xf32>
    %119 = vector.shape_cast %118 : vector<2x8xf32> to vector<2x8x1xf32>
    %120 = tpu.reciprocal %119 {approx = true} : vector<2x8x1xf32> -> vector<2x8x1xf32>
    %121 = vector.broadcast %120 : vector<2x8x1xf32> to vector<2x8x8xf32>
    %122 = arith.mulf %117, %121 : vector<2x8x8xf32>
    %123 = arith.truncf %122 : vector<2x8x8xf32> to vector<2x8x8xbf16>
    "tpu.trace_start"() <{level = 10 : i32, message = "bnm,bmd->bnd"}> : () -> ()
    %cst_45 = arith.constant dense<0.000000e+00> : vector<2x8x64xf32>
    %124 = tpu.matmul %123, %109, %cst_45 {dimension_numbers = #tpu.dot_dimension_numbers<[2], [1], [1], [2], [0, 0, 0, 1, 1, 2], [0], [0]>} : vector<2x8x8xbf16>, vector<2x8x64xbf16>, vector<2x8x64xf32> -> vector<2x8x64xf32>
    "tpu.trace_stop"() : () -> ()
    %125 = tpu.concatenate %70, %88, %106, %124 in 2 : vector<2x8x64xf32>, vector<2x8x64xf32>, vector<2x8x64xf32>, vector<2x8x64xf32> -> vector<2x8x256xf32>
    %126 = vector.shape_cast %125 : vector<2x8x256xf32> to vector<16x256xf32>
    %127 = arith.truncf %126 : vector<16x256xf32> to vector<16x256xbf16>
    %c0_46 = arith.constant 0 : index
    %c0_47 = arith.constant 0 : index
    %c0_48 = arith.constant 0 : index
    %128 = vector.load %arg8[%c0_46, %c0_47, %c0_48] : memref<1x256x128xbf16, #tpu.memory_space<vmem>>, vector<1x256x128xbf16>
    %129 = vector.shape_cast %128 : vector<1x256x128xbf16> to vector<256x128xbf16>
    %cst_49 = arith.constant dense<0.000000e+00> : vector<16x128xf32>
    %130 = tpu.matmul %127, %129, %cst_49 {dimension_numbers = #tpu.dot_dimension_numbers<[1], [0], [0], [1], [0, 0, 1, 1], [], []>} : vector<16x256xbf16>, vector<256x128xbf16>, vector<16x128xf32> -> vector<16x128xf32>
    %131 = arith.addf %4, %130 : vector<16x128xf32>
    %c0_50 = arith.constant 0 : index
    %c0_51 = arith.constant 0 : index
    %c0_52 = arith.constant 0 : index
    %132 = vector.load %arg9[%c0_50, %c0_51, %c0_52] : memref<1x1x128xf32, #tpu.memory_space<vmem>>, vector<1x1x128xf32>
    %133 = vector.shape_cast %132 : vector<1x1x128xf32> to vector<1x128xf32>
    %134 = vector.broadcast %133 : vector<1x128xf32> to vector<16x128xf32>
    %135 = arith.addf %131, %134 : vector<16x128xf32>
    %c0_53 = arith.constant 0 : index
    %c0_54 = arith.constant 0 : index
    %c0_55 = arith.constant 0 : index
    %136 = vector.load %arg10[%c0_53, %c0_54, %c0_55] : memref<1x1x128xf32, #tpu.memory_space<vmem>>, vector<1x1x128xf32>
    %137 = vector.shape_cast %136 : vector<1x1x128xf32> to vector<1x128xf32>
    %c0_56 = arith.constant 0 : index
    %c0_57 = arith.constant 0 : index
    %c0_58 = arith.constant 0 : index
    %138 = vector.load %arg11[%c0_56, %c0_57, %c0_58] : memref<1x1x128xf32, #tpu.memory_space<vmem>>, vector<1x1x128xf32>
    %139 = vector.shape_cast %138 : vector<1x1x128xf32> to vector<1x128xf32>
    %cst_59 = arith.constant dense<0.000000e+00> : vector<16xf32>
    %140 = vector.multi_reduction <add>, %135, %cst_59 [1] : vector<16x128xf32> to vector<16xf32>
    %141 = vector.shape_cast %140 : vector<16xf32> to vector<16x1xf32>
    %cst_60 = arith.constant 1.280000e+02 : f32
    %142 = vector.broadcast %cst_60 : f32 to vector<16x1xf32>
    %143 = arith.divf %141, %142 : vector<16x1xf32>
    %144 = vector.broadcast %143 : vector<16x1xf32> to vector<16x128xf32>
    %145 = arith.subf %135, %144 : vector<16x128xf32>
    %146 = arith.mulf %145, %145 : vector<16x128xf32>
    %cst_61 = arith.constant dense<0.000000e+00> : vector<16xf32>
    %147 = vector.multi_reduction <add>, %146, %cst_61 [1] : vector<16x128xf32> to vector<16xf32>
    %148 = vector.shape_cast %147 : vector<16xf32> to vector<16x1xf32>
    %cst_62 = arith.constant 1.280000e+02 : f32
    %149 = vector.broadcast %cst_62 : f32 to vector<16x1xf32>
    %150 = arith.divf %148, %149 : vector<16x1xf32>
    %151 = vector.broadcast %143 : vector<16x1xf32> to vector<16x128xf32>
    %152 = arith.subf %135, %151 : vector<16x128xf32>
    %cst_63 = arith.constant 9.99999974E-6 : f32
    %153 = vector.broadcast %cst_63 : f32 to vector<16x1xf32>
    %154 = arith.addf %150, %153 : vector<16x1xf32>
    %155 = math.rsqrt %154 : vector<16x1xf32>
    %156 = vector.broadcast %155 : vector<16x1xf32> to vector<16x128xf32>
    %157 = arith.mulf %152, %156 : vector<16x128xf32>
    %158 = vector.broadcast %137 : vector<1x128xf32> to vector<16x128xf32>
    %159 = arith.mulf %157, %158 : vector<16x128xf32>
    %160 = vector.broadcast %139 : vector<1x128xf32> to vector<16x128xf32>
    %161 = arith.addf %159, %160 : vector<16x128xf32>
    %162 = arith.truncf %161 : vector<16x128xf32> to vector<16x128xbf16>
    %c0_64 = arith.constant 0 : index
    %c0_65 = arith.constant 0 : index
    %c0_66 = arith.constant 0 : index
    %163 = vector.load %arg12[%c0_64, %c0_65, %c0_66] : memref<1x128x128xbf16, #tpu.memory_space<vmem>>, vector<1x128x128xbf16>
    %164 = vector.shape_cast %163 : vector<1x128x128xbf16> to vector<128x128xbf16>
    %cst_67 = arith.constant dense<0.000000e+00> : vector<16x128xf32>
    %165 = tpu.matmul %162, %164, %cst_67 {dimension_numbers = #tpu.dot_dimension_numbers<[1], [0], [0], [1], [0, 0, 1, 1], [], []>} : vector<16x128xbf16>, vector<128x128xbf16>, vector<16x128xf32> -> vector<16x128xf32>
    %c0_68 = arith.constant 0 : index
    %c0_69 = arith.constant 0 : index
    %c0_70 = arith.constant 0 : index
    %166 = vector.load %arg13[%c0_68, %c0_69, %c0_70] : memref<1x1x128xf32, #tpu.memory_space<vmem>>, vector<1x1x128xf32>
    %167 = vector.shape_cast %166 : vector<1x1x128xf32> to vector<1x128xf32>
    %168 = vector.broadcast %167 : vector<1x128xf32> to vector<16x128xf32>
    %169 = arith.addf %165, %168 : vector<16x128xf32>
    %cst_71 = arith.constant 5.000000e-01 : f32
    %170 = vector.broadcast %cst_71 : f32 to vector<16x128xf32>
    %171 = arith.mulf %170, %169 : vector<16x128xf32>
    %cst_72 = arith.constant 4.471500e-02 : f32
    %172 = vector.broadcast %cst_72 : f32 to vector<16x128xf32>
    %173 = arith.mulf %172, %169 : vector<16x128xf32>
    %174 = arith.mulf %173, %169 : vector<16x128xf32>
    %175 = arith.mulf %174, %169 : vector<16x128xf32>
    %176 = arith.addf %169, %175 : vector<16x128xf32>
    %cst_73 = arith.constant 0.797884583 : f32
    %177 = vector.broadcast %cst_73 : f32 to vector<16x128xf32>
    %178 = arith.mulf %177, %176 : vector<16x128xf32>
    %179 = math.tanh %178 : vector<16x128xf32>
    %cst_74 = arith.constant 1.000000e+00 : f32
    %180 = vector.broadcast %cst_74 : f32 to vector<16x128xf32>
    %181 = arith.addf %180, %179 : vector<16x128xf32>
    %182 = arith.mulf %171, %181 : vector<16x128xf32>
    %183 = arith.truncf %182 : vector<16x128xf32> to vector<16x128xbf16>
    %c0_75 = arith.constant 0 : index
    %c0_76 = arith.constant 0 : index
    %c0_77 = arith.constant 0 : index
    %184 = vector.load %arg14[%c0_75, %c0_76, %c0_77] : memref<1x128x128xbf16, #tpu.memory_space<vmem>>, vector<1x128x128xbf16>
    %185 = vector.shape_cast %184 : vector<1x128x128xbf16> to vector<128x128xbf16>
    %cst_78 = arith.constant dense<0.000000e+00> : vector<16x128xf32>
    %186 = tpu.matmul %183, %185, %cst_78 {dimension_numbers = #tpu.dot_dimension_numbers<[1], [0], [0], [1], [0, 0, 1, 1], [], []>} : vector<16x128xbf16>, vector<128x128xbf16>, vector<16x128xf32> -> vector<16x128xf32>
    %187 = arith.addf %135, %186 : vector<16x128xf32>
    %c0_79 = arith.constant 0 : index
    %c0_80 = arith.constant 0 : index
    %c0_81 = arith.constant 0 : index
    %188 = vector.load %arg15[%c0_79, %c0_80, %c0_81] : memref<1x1x128xf32, #tpu.memory_space<vmem>>, vector<1x1x128xf32>
    %189 = vector.shape_cast %188 : vector<1x1x128xf32> to vector<1x128xf32>
    %190 = vector.broadcast %189 : vector<1x128xf32> to vector<16x128xf32>
    %191 = arith.addf %187, %190 : vector<16x128xf32>
    %c1_i32 = arith.constant 1 : i32
    %192 = arith.cmpi slt, %arg1, %c1_i32 : i32
    %193 = arith.extui %192 : i1 to i32
    %c0_i32_82 = arith.constant 0 : i32
    %194 = arith.cmpi ne, %193, %c0_i32_82 : i32
    scf.if %194 {
      %198 = vector.shape_cast %191 : vector<16x128xf32> to vector<2x8x128xf32>
      %c0_85 = arith.constant 0 : index
      %c0_86 = arith.constant 0 : index
      %c0_87 = arith.constant 0 : index
      %199 = vector.load %arg18[%c0_85, %c0_86, %c0_87] : memref<2x8x128xf32, #tpu.memory_space<vmem>>, vector<2x8x128xf32>
      tpu.vector_store %arg18[%c0_85, %c0_86, %c0_87], %198 {strides = array<i32>} : memref<2x8x128xf32, #tpu.memory_space<vmem>>, vector<2x8x128xf32>,
    } else {
    }
    %c1_i32_83 = arith.constant 1 : i32
    %195 = arith.cmpi eq, %arg1, %c1_i32_83 : i32
    %196 = arith.extui %195 : i1 to i32
    %c0_i32_84 = arith.constant 0 : i32
    %197 = arith.cmpi ne, %196, %c0_i32_84 : i32
    scf.if %197 {
      %c0_85 = arith.constant 0 : index
      %c0_86 = arith.constant 0 : index
      %198 = vector.load %arg16[%c0_85, %c0_86] : memref<1x128xf32, #tpu.memory_space<vmem>>, vector<1x128xf32>
      %c0_87 = arith.constant 0 : index
      %c0_88 = arith.constant 0 : index
      %199 = vector.load %arg17[%c0_87, %c0_88] : memref<1x128xf32, #tpu.memory_space<vmem>>, vector<1x128xf32>
      %cst_89 = arith.constant dense<0.000000e+00> : vector<16xf32>
      %200 = vector.multi_reduction <add>, %191, %cst_89 [1] : vector<16x128xf32> to vector<16xf32>
      %201 = vector.shape_cast %200 : vector<16xf32> to vector<16x1xf32>
      %cst_90 = arith.constant 1.280000e+02 : f32
      %202 = vector.broadcast %cst_90 : f32 to vector<16x1xf32>
      %203 = arith.divf %201, %202 : vector<16x1xf32>
      %204 = vector.broadcast %203 : vector<16x1xf32> to vector<16x128xf32>
      %205 = arith.subf %191, %204 : vector<16x128xf32>
      %206 = arith.mulf %205, %205 : vector<16x128xf32>
      %cst_91 = arith.constant dense<0.000000e+00> : vector<16xf32>
      %207 = vector.multi_reduction <add>, %206, %cst_91 [1] : vector<16x128xf32> to vector<16xf32>
      %208 = vector.shape_cast %207 : vector<16xf32> to vector<16x1xf32>
      %cst_92 = arith.constant 1.280000e+02 : f32
      %209 = vector.broadcast %cst_92 : f32 to vector<16x1xf32>
      %210 = arith.divf %208, %209 : vector<16x1xf32>
      %211 = vector.broadcast %203 : vector<16x1xf32> to vector<16x128xf32>
      %212 = arith.subf %191, %211 : vector<16x128xf32>
      %cst_93 = arith.constant 9.99999974E-6 : f32
      %213 = vector.broadcast %cst_93 : f32 to vector<16x1xf32>
      %214 = arith.addf %210, %213 : vector<16x1xf32>
      %215 = math.rsqrt %214 : vector<16x1xf32>
      %216 = vector.broadcast %215 : vector<16x1xf32> to vector<16x128xf32>
      %217 = arith.mulf %212, %216 : vector<16x128xf32>
      %218 = vector.broadcast %198 : vector<1x128xf32> to vector<16x128xf32>
      %219 = arith.mulf %217, %218 : vector<16x128xf32>
      %220 = vector.broadcast %199 : vector<1x128xf32> to vector<16x128xf32>
      %221 = arith.addf %219, %220 : vector<16x128xf32>
      %222 = vector.shape_cast %221 : vector<16x128xf32> to vector<2x8x128xf32>
      %c0_94 = arith.constant 0 : index
      %c0_95 = arith.constant 0 : index
      %c0_96 = arith.constant 0 : index
      %223 = vector.load %arg18[%c0_94, %c0_95, %c0_96] : memref<2x8x128xf32, #tpu.memory_space<vmem>>, vector<2x8x128xf32>
      tpu.vector_store %arg18[%c0_94, %c0_95, %c0_96], %222 {strides = array<i32>} : memref<2x8x128xf32, #tpu.memory_space<vmem>>, vector<2x8x128xf32>,
    } else {
    }
    return
  }
  func.func @transform_0(%arg0: i32, %arg1: i32) -> (i32, i32, i32) {
    %c0_i32 = arith.constant 0 : i32
    %c0_i32_0 = arith.constant 0 : i32
    %c0_i32_1 = arith.constant 0 : i32
    return %arg0, %c0_i32, %c0_i32_0 : i32, i32, i32
  }
  func.func @transform_1(%arg0: i32, %arg1: i32) -> (i32, i32, i32) {
    %c0_i32 = arith.constant 0 : i32
    %c0_i32_0 = arith.constant 0 : i32
    %c0_i32_1 = arith.constant 0 : i32
    return %arg0, %c0_i32, %c0_i32_0 : i32, i32, i32
  }
  func.func @transform_2(%arg0: i32, %arg1: i32) -> (i32, i32, i32) {
    %c0_i32 = arith.constant 0 : i32
    %c0_i32_0 = arith.constant 0 : i32
    %c0_i32_1 = arith.constant 0 : i32
    return %arg1, %c0_i32, %c0_i32_0 : i32, i32, i32
  }
  func.func @transform_3(%arg0: i32, %arg1: i32) -> (i32, i32, i32) {
    %c0_i32 = arith.constant 0 : i32
    %c0_i32_0 = arith.constant 0 : i32
    %c0_i32_1 = arith.constant 0 : i32
    return %arg1, %c0_i32, %c0_i32_0 : i32, i32, i32
  }
  func.func @transform_4(%arg0: i32, %arg1: i32) -> (i32, i32, i32) {
    %c0_i32 = arith.constant 0 : i32
    %c0_i32_0 = arith.constant 0 : i32
    %c0_i32_1 = arith.constant 0 : i32
    return %arg1, %c0_i32, %c0_i32_0 : i32, i32, i32
  }
  func.func @transform_5(%arg0: i32, %arg1: i32) -> (i32, i32, i32) {
    %c0_i32 = arith.constant 0 : i32
    %c0_i32_0 = arith.constant 0 : i32
    %c0_i32_1 = arith.constant 0 : i32
    return %arg1, %c0_i32, %c0_i32_0 : i32, i32, i32
  }
  func.func @transform_6(%arg0: i32, %arg1: i32) -> (i32, i32, i32) {
    %c0_i32 = arith.constant 0 : i32
    %c0_i32_0 = arith.constant 0 : i32
    %c0_i32_1 = arith.constant 0 : i32
    return %arg1, %c0_i32, %c0_i32_0 : i32, i32, i32
  }
  func.func @transform_7(%arg0: i32, %arg1: i32) -> (i32, i32, i32) {
    %c0_i32 = arith.constant 0 : i32
    %c0_i32_0 = arith.constant 0 : i32
    %c0_i32_1 = arith.constant 0 : i32
    return %arg1, %c0_i32, %c0_i32_0 : i32, i32, i32
  }
  func.func @transform_8(%arg0: i32, %arg1: i32) -> (i32, i32, i32) {
    %c0_i32 = arith.constant 0 : i32
    %c0_i32_0 = arith.constant 0 : i32
    %c0_i32_1 = arith.constant 0 : i32
    return %arg1, %c0_i32, %c0_i32_0 : i32, i32, i32
  }
  func.func @transform_9(%arg0: i32, %arg1: i32) -> (i32, i32, i32) {
    %c0_i32 = arith.constant 0 : i32
    %c0_i32_0 = arith.constant 0 : i32
    %c0_i32_1 = arith.constant 0 : i32
    return %arg1, %c0_i32, %c0_i32_0 : i32, i32, i32
  }
  func.func @transform_10(%arg0: i32, %arg1: i32) -> (i32, i32, i32) {
    %c0_i32 = arith.constant 0 : i32
    %c0_i32_0 = arith.constant 0 : i32
    %c0_i32_1 = arith.constant 0 : i32
    return %arg1, %c0_i32, %c0_i32_0 : i32, i32, i32
  }
  func.func @transform_11(%arg0: i32, %arg1: i32) -> (i32, i32, i32) {
    %c0_i32 = arith.constant 0 : i32
    %c0_i32_0 = arith.constant 0 : i32
    %c0_i32_1 = arith.constant 0 : i32
    return %arg1, %c0_i32, %c0_i32_0 : i32, i32, i32
  }
  func.func @transform_12(%arg0: i32, %arg1: i32) -> (i32, i32, i32) {
    %c0_i32 = arith.constant 0 : i32
    %c0_i32_0 = arith.constant 0 : i32
    %c0_i32_1 = arith.constant 0 : i32
    return %arg1, %c0_i32, %c0_i32_0 : i32, i32, i32
  }
  func.func @transform_13(%arg0: i32, %arg1: i32) -> (i32, i32, i32) {
    %c0_i32 = arith.constant 0 : i32
    %c0_i32_0 = arith.constant 0 : i32
    %c0_i32_1 = arith.constant 0 : i32
    return %arg1, %c0_i32, %c0_i32_0 : i32, i32, i32
  }
  func.func @transform_14(%arg0: i32, %arg1: i32) -> (i32, i32) {
    %c0_i32 = arith.constant 0 : i32
    %c0_i32_0 = arith.constant 0 : i32
    %c0_i32_1 = arith.constant 0 : i32
    return %c0_i32, %c0_i32_0 : i32, i32
  }
  func.func @transform_15(%arg0: i32, %arg1: i32) -> (i32, i32) {
    %c0_i32 = arith.constant 0 : i32
    %c0_i32_0 = arith.constant 0 : i32
    %c0_i32_1 = arith.constant 0 : i32
    return %c0_i32, %c0_i32_0 : i32, i32
  }
  func.func @transform_16(%arg0: i32, %arg1: i32) -> (i32, i32, i32) {
    %c0_i32 = arith.constant 0 : i32
    %c0_i32_0 = arith.constant 0 : i32
    %c0_i32_1 = arith.constant 0 : i32
    return %arg0, %c0_i32, %c0_i32_0 : i32, i32, i32
  }
}

</mosaic_0001>

<bundles_post_ra>
// kernel: tpu_custom_call.1
= control target key start
LH: loop header
LB: loop body
LE: loop exit
PB: predicated region body
PF: predicated region fallthrough
CT: control target
= control target key end

     0   :  { %s4893_s0 = inlined_call_operand.hbm [shape: f32[2,8,128], index: 0, kind: input, shape index: {}]   ;;  %s4894_s1 = inlined_call_operand.vmem [shape: f32[2,1,64], index: 1, kind: input, shape index: {}]   ;;  %s4895_s2 = inlined_call_operand.vmem [shape: f32[2,1,128], index: 2, kind: input, shape index: {}]   ;;  %s4896_s3 = inlined_call_operand.vmem [shape: f32[2,1,128], index: 3, kind: input, shape index: {}]   ;;  %s4897_s4 = inlined_call_operand.hbm [shape: bf16[2,128,768], index: 4, kind: input, shape index: {}]   ;;  %s4898_s5 = inlined_call_operand.hbm [shape: bf16[2,64,256], index: 5, kind: input, shape index: {}]   ;;  %s4899_s6 = inlined_call_operand.hbm [shape: bf16[2,256,128], index: 6, kind: input, shape index: {}]   ;;  %s4900_s7 = inlined_call_operand.vmem [shape: f32[2,1,128], index: 7, kind: input, shape index: {}]   ;;  %s4901_s8 = inlined_call_operand.vmem [shape: f32[2,1,128], index: 8, kind: input, shape index: {}]   ;;  %s4902_s9 = inlined_call_operand.vmem [shape: f32[2,1,128], index: 9, kind: input, shape index: {}]   ;;  %s4903_s10 = inlined_call_operand.hbm [shape: bf16[2,128,128], index: 10, kind: input, shape index: {}]   ;;  %s4904_s11 = inlined_call_operand.vmem [shape: f32[2,1,128], index: 11, kind: input, shape index: {}]   ;;  %s4905_s12 = inlined_call_operand.hbm [shape: bf16[2,128,128], index: 12, kind: input, shape index: {}]   ;;  %s4906_s13 = inlined_call_operand.vmem [shape: f32[2,1,128], index: 13, kind: input, shape index: {}]   ;;  %s4907_s14 = inlined_call_operand.vmem [shape: f32[1,128], index: 14, kind: input, shape index: {}]   ;;  %s4908_s15 = inlined_call_operand.vmem [shape: f32[1,128], index: 15, kind: input, shape index: {}]   ;;  %s4909_s16 = inlined_call_operand.hbm [shape: f32[2,8,128], index: 16, kind: output, shape index: {}]  }
   0x1   :  { %4928 = sst [smem:[#allocation24_spill]] %s4893_s0 }
   0x2   :  { %4929 = sst [smem:[#allocation25_spill]] %s4894_s1 }
   0x3   :  { %4930 = sst [smem:[#allocation26_spill]] %s4896_s3 }
   0x4   :  { %4931 = sst [smem:[#allocation27_spill]] %s4897_s4 }
   0x5   :  { %4932 = sst [smem:[#allocation28_spill]] %s4899_s6 }
   0x6   :  { %4933 = sst [smem:[#allocation29_spill]] %s4900_s7 }
   0x7   :  { %4934 = sst [smem:[#allocation30_spill]] %s4901_s8 }
   0x8   :  { %4935 = sst [smem:[#allocation31_spill]] %s4902_s9 }
   0x9   :  { %4936 = sst [smem:[#allocation32_spill]] %s4904_s11 }
   0xa   :  { %4937 = sst [smem:[#allocation33_spill]] %s4906_s13 }
   0xb   :  { %4938 = sst [smem:[#allocation34_spill]] %s4907_s14 }
   0xc   :  { %4939 = sst [smem:[#allocation35_spill]] %s4908_s15 }
   0xd   :  { %4940 = sst [smem:[#allocation36_spill]] %s4909_s16 }
   0xe   :  { %21 = vsyncpa [#allocation3], 0 }
   0xf   :  { %22 = vsyncpa [#allocation6], 0 }
  0x10   :  { %24 = vsyncpa [#allocation6 + $0x1], 0 }
  0x11   :  { %25 = vsyncpa [#allocation9], 0 }
  0x12   :  { %27 = vsyncpa [#allocation9 + $0x1], 0 }
  0x13   :  { %28 = vsyncpa [#allocation12], 0 }
  0x14   :  { %30 = vsyncpa [#allocation12 + $0x1], 0 }
  0x15   :  { %31 = vsyncpa [#allocation4], 0  ;;  %s4161_s21 = smov 0   ;;  %s4163_s22 = smov 0  }
  0x16   :  { %s4165_s23 = smov 0   ;;  %s4167_s24 = smov 0  }
  0x17   :  { %s4169_s25 = smov 0   ;;  %s4171_s26 = smov 0  }
  0x18 LB: > { %4941 = sst [smem:[#allocation19_spill]] %s4042_s23  ;;  %s46_s27 = sadd.s32 1, %s4050_s25  ;;  %s4054_s26 = sphi %s4171_s26, %s37_s26   ;;  %s4050_s25 = sphi %s4169_s25, %s4978_s25   ;;  %s4046_s24 = sphi %s4167_s24, %s4977_s24   ;;  %s4042_s23 = sphi %s4165_s23, %s4976_s23   ;;  %s4038_s22 = sphi %s4163_s22, %s4980_s22   ;;  %s4034_s21 = sphi %s4161_s21, %s4979_s21  }
  0x19   : > { %4942 = sst [smem:[#allocation20_spill]] %s4050_s25  ;;  %s160_s28 = sadd.s32 1, %s4042_s23 }
  0x1a   : > { %4943 = sst [smem:[#allocation21_spill]] %s4054_s26  ;;  %p47_p0 = scmp.ge.s32.totalorder %s46_s27, 2 }
  0x1b   : > { %p167_p1 = scmp.ne.s32.totalorder %s4042_s23, %s4038_s22  ;;  %p168_p2 = scmp.eq.s32.totalorder %s4054_s26, 0 }
  0x1c   : > { %s4982_s27 = smov (%p47_p0, %s46_s27), 0  ;;  %p3543_p4 = scmp.lt.s32.totalorder %s4054_s26, 2 }
  0x1d   : > { %4944 = sst [smem:[#allocation22_spill]] %s4982_s27  ;;  %p169_p3 = por %p168_p2, %p167_p1 }
  0x1e   : > { %s157_s29 = ssub.s32 %s4050_s25, %s4982_s27  ;;  %s4203_s0 = sand.u32 1, %s4042_s23  }
  0x1f   : > { %p158_p5 = scmp.eq.s32.totalorder %s157_s29, 0  ;;  %s3502_s17 = smul.u32 6144, %s4050_s25 }
  0x20   : > { %s3501_s19 = smul.u32 384, %s4203_s0  ;;  %s4946_s4 = sld [smem:[#allocation27_spill]] }
  0x21   : > { %s4207_s18 = scalar_select %p158_p5, %s4042_s23, %s160_s28  }
  0x22   : > { %p4215_p6 = pnand %p3543_p4, %p169_p3  ;;  %s545_s29 = scalar_lea.vmem [#allocation5], %s3501_s19 }
  0x23   : > { %4945 = sst [smem:[#allocation23_spill]] %s4207_s18  ;;  %s552_s30 = sshll.u32 %s545_s29, 4  ;;  %s4219_s30 = int_to_ptr.vmem [resolvable:$true] %s552_s30 }
  0x24   : > { %s4947_s27 = scalar_select %p4215_p6, 1, 0 }
  0x25   : > { %s4948_s28 = sand.u32 1, %s4054_s26   ;;  %p4229_p8 = pneg %p4215_p6 }
  0x26   : > { %s4213_s15 = scalar_lea.hbm %s4946_s4, %s3502_s17  ;;  %s4223_s18 = scalar_lea.sflag [#allocation6], %s4948_s28 }
  0x27   : > { %s3784_s23 = scalar_lea.hbm %s4213_s15, 6144  ;;  %s3789_s19 = scalar_lea.hbm %s4946_s4, 12288 }
  0x28   : > { %p3785_p7 = scmp.ne.s32.totalorder %s4213_s15, %s3784_s23  ;;  %p3790_p11 = scmp.lt.u32.totalorder %s4213_s15, %s4946_s4 }
  0x29   : > { %s4949_s16 = scalar_select %p4229_p8, 1, 0 }
  0x2a   : > { %p3787_p9 = pnand %p4229_p8, %p3785_p7  ;;  %p3791_p12 = scmp.lt.u32.totalorder %s3789_s19, %s3784_s23 }
  0x2b   : > { %p3793_p0 = scmp.lt.u32.totalorder %s3784_s23, %s4213_s15 }
  0x2c   : > { %p3788_p10 = pneg %p3787_p9  ;;  %p3792_p13 = por %p3791_p12, %p3790_p11 }
  0x2e   : > { %p3794_p1 = por %p3793_p0, %p3792_p13 }
  0x30   : > { %p3795_p2 = pnand %p3794_p1, %p3788_p10 }
  0x32   : > { %3798 = shalt.err (!%p3795_p2)
}
  0x33   : > { %s3799_s28 = scalar_lea.vmem %s4219_s30, 6144  ;;  %s4056_s17 = smov [#allocation5]  }
  0x34   : > { %p3800_p3 = scmp.ne.s32.totalorder %s4219_s30, %s3799_s28  ;;  %s3804_s20 = sshll.u32 %s4056_s17, 4  ;;  %s3805_s20 = int_to_ptr.vmem [resolvable:$false] %s3804_s20 }
  0x35   : > { %s3806_s14 = scalar_lea.vmem %s3805_s20, 12288  ;;  %p3807_p7 = scmp.lt.s32.totalorder %s4219_s30, %s3805_s20 }
  0x36   : > { %p3802_p4 = pnand %p3800_p3, %p4229_p8  ;;  %p3808_p9 = scmp.lt.s32.totalorder %s3806_s14, %s3799_s28 }
  0x38   : > { %p3803_p5 = pneg %p3802_p4  ;;  %p3809_p11 = por %p3808_p9, %p3807_p7 }
  0x3a   : > { %p3810_p12 = pnand %p3809_p11, %p3803_p5 }
  0x3c   : > { %3813 = shalt.err (!%p3810_p12)
}
  0x3d   : > { %s4057_s23 = smov 384   ;;  %s4058_s19 = smov 24  }
  0x3e   : > { %3529 = dma.hbm_to_vmem [thread:$0]  (!%p4215_p6), %s4213_s15, 6144, %s4219_s30, %s4223_s18, %s4057_s23, %s4057_s23, %s4058_s19  }
  0x3f   : > { %s3154_s29 = sshll.u32 %s4203_s0, 7  ;;  %s3290_s17 = sshll.u32 %s4050_s25, 11 }
  0x40   : > { %s4950_s6 = sld [smem:[#allocation28_spill]]  ;;  %s587_s14 = scalar_lea.vmem [#allocation8], %s3154_s29 }
  0x41   : > { %s594_s13 = sshll.u32 %s587_s14, 4  ;;  %s4951_s11 = sand.u32 1, %s4054_s26   ;;  %s4260_s13 = int_to_ptr.vmem [resolvable:$true] %s594_s13 }
  0x42   : > { %s4264_s9 = scalar_lea.sflag [#allocation9], %s4951_s11 }
  0x46   : > { %s4258_s28 = scalar_lea.hbm %s4950_s6, %s3290_s17  ;;  %s3819_s30 = scalar_lea.hbm %s4950_s6, 4096 }
  0x47   : > { %s3814_s8 = scalar_lea.hbm %s4258_s28, 2048  ;;  %p3820_p1 = scmp.lt.u32.totalorder %s4258_s28, %s4950_s6 }
  0x48   : > { %p3815_p10 = scmp.ne.s32.totalorder %s4258_s28, %s3814_s8  ;;  %p3821_p2 = scmp.lt.u32.totalorder %s3819_s30, %s3814_s8 }
  0x49   : > { %p3823_p4 = scmp.lt.u32.totalorder %s3814_s8, %s4258_s28 }
  0x4a   : > { %p3817_p13 = pnand %p3815_p10, %p4229_p8  ;;  %p3822_p3 = por %p3821_p2, %p3820_p1 }
  0x4c   : > { %p3818_p0 = pneg %p3817_p13  ;;  %p3824_p5 = por %p3823_p4, %p3822_p3 }
  0x4e   : > { %p3825_p7 = pnand %p3824_p5, %p3818_p0 }
  0x50   : > { %3828 = shalt.err (!%p3825_p7)
}
  0x51   : > { %s3829_s11 = scalar_lea.vmem %s4260_s13, 2048  ;;  %s4059_s29 = smov [#allocation8]  }
  0x52   : > { %p3830_p9 = scmp.ne.s32.totalorder %s4260_s13, %s3829_s11  ;;  %s3834_s17 = sshll.u32 %s4059_s29, 4  ;;  %s3835_s17 = int_to_ptr.vmem [resolvable:$false] %s3834_s17 }
  0x53   : > { %s3836_s20 = scalar_lea.vmem %s3835_s17, 4096  ;;  %p3837_p10 = scmp.lt.s32.totalorder %s4260_s13, %s3835_s17 }
  0x54   : > { %p3832_p11 = pnand %p3830_p9, %p4229_p8  ;;  %p3838_p13 = scmp.lt.s32.totalorder %s3836_s20, %s3829_s11 }
  0x56   : > { %p3833_p12 = pneg %p3832_p11  ;;  %p3839_p1 = por %p3838_p13, %p3837_p10 }
  0x58   : > { %p3840_p2 = pnand %p3839_p1, %p3833_p12 }
  0x5a   : > { %3843 = shalt.err (!%p3840_p2)
}
  0x5b   : > { %s4914_s8 = smov 64   ;;  %s4916_s14 = smov 4  }
  0x5c   : > { %3535 = dma.hbm_to_vmem [thread:$0]  (!%p4215_p6), %s4258_s28, 2048, %s4260_s13, %s4264_s9, %s4914_s8, %s4914_s8, %s4916_s14  }
  0x5d   : > { %s4292_s15 = sadd.s32 4294967295, %s4054_s26   ;;  %p173_p0 = scmp.ne.s32.totalorder %s4038_s22, %s4034_s21 }
  0x5e   : > { %p4920_p3 = scmp.eq.s32.totalorder %s4292_s15, 0  ;;  %p3146_p4 = scmp.ge.s32.totalorder %s4054_s26, 1 }
  0x5f   : > { %p486_p5 = scmp.lt.s32.totalorder %s4054_s26, 3  ;;  %s4062_s13 = smov [#allocation2]  }
  0x60   : > { %p4301_p7 = por %p4920_p3, %p173_p0  ;;  %s501_s28 = sshll.u32 %s4062_s13, 4  ;;  %s4309_s28 = int_to_ptr.vmem [resolvable:$true] %s501_s28 }
  0x61   : > { %p4305_p9 = pnand %p3146_p4, %p486_p5  ;;  %s4314_s21 = sshll.u32 %s4203_s0, 6 }
  0x62   : > { %s4952_s4 = scalar_select %p4301_p7, 1, 0 }
  0x63   : > { %s4953_s30 = scalar_select %p4305_p9, 1, 0 }
  0x64   : > { %p3522_p11 = pneg %p4305_p9  ;;  %s4317_s23 = sshll.u32 %s4050_s25, 10 }
  0x65   : > { %s4329_s17 = scalar_lea.hbm %s4898_s5, %s4317_s23  ;;  %s566_s20 = scalar_lea.vmem [#allocation7], %s4314_s21 }
  0x66   : > { %p4321_p12 = pnand %p3522_p11, %p4920_p3  ;;  %s573_s13 = sshll.u32 %s566_s20, 4  ;;  %s4332_s13 = int_to_ptr.vmem [resolvable:$true] %s573_s13 }
  0x67   : > { %s4955_s6 = sld [smem:[#allocation24_spill]] }
  0x68   : > { %p3846_p13 = pneg %p4321_p12 }
  0x6d   : > { %s3844_s25 = scalar_lea.hbm %s4955_s6, 256 }
  0x6e   : > { %p3845_p10 = scmp.ne.s32.totalorder %s4955_s6, %s3844_s25  ;;  %p3851_p0 = scmp.lt.u32.totalorder %s3844_s25, %s4955_s6 }
  0x70   : > { %p3847_p1 = pnand %p3846_p13, %p3845_p10 }
  0x72   : > { %p3848_p2 = pneg %p3847_p1 }
  0x74   : > { %p3853_p4 = pnand %p3851_p0, %p3848_p2 }
  0x76   : > { %3856 = shalt.err (!%p3853_p4)
}
  0x77   : > { %s3857_s20 = scalar_lea.vmem %s4309_s28, 256  ;;  %p3865_p7 = scmp.lt.s32.totalorder %s4309_s28, %s4309_s28 }
  0x78   : > { %p3858_p5 = scmp.ne.s32.totalorder %s4309_s28, %s3857_s20  ;;  %p3866_p9 = scmp.lt.s32.totalorder %s3857_s20, %s3857_s20 }
  0x7a   : > { %p3860_p11 = pnand %p3858_p5, %p3846_p13  ;;  %p3867_p6 = por %p3866_p9, %p3865_p7 }
  0x7c   : > { %p3861_p3 = pneg %p3860_p11 }
  0x7e   : > { %p3868_p8 = pnand %p3867_p6, %p3861_p3 }
  0x80   : > { %3871 = shalt.err (!%p3868_p8)
}
  0x81   : > { %s4063_s7 = smov 128   ;;  %s4064_s25 = smov 8  }
  0x82   : > { %3525 = dma.hbm_to_vmem [thread:$0]  (!%p4321_p12), %s4955_s6, 256, %s4309_s28, [#allocation3], %s4063_s7, %s4063_s7, %s4064_s25  }
  0x83   : > { %s3872_s14 = scalar_lea.hbm %s4329_s17, 1024  ;;  %p4956_p8 = scmp.ne.s32.totalorder %s4949_s16, 0 }
  0x84   : > { %p3873_p6 = scmp.ne.s32.totalorder %s4329_s17, %s3872_s14  ;;  %s3877_s20 = scalar_lea.hbm %s4898_s5, 2048 }
  0x85   : > { %p3878_p9 = scmp.lt.u32.totalorder %s4329_s17, %s4898_s5  ;;  %p3879_p10 = scmp.lt.u32.totalorder %s3877_s20, %s3872_s14 }
  0x86   : > { %p3875_p3 = pnand %p3873_p6, %p4956_p8  ;;  %p3881_p1 = scmp.lt.u32.totalorder %s3872_s14, %s4329_s17 }
  0x87   : > { %p3880_p13 = por %p3879_p10, %p3878_p9 }
  0x88   : > { %p3876_p7 = pneg %p3875_p3 }
  0x89   : > { %p3882_p2 = por %p3881_p1, %p3880_p13 }
  0x8b   : > { %p3883_p0 = pnand %p3882_p2, %p3876_p7 }
  0x8d   : > { %3886 = shalt.err (!%p3883_p0)
}
  0x8e   : > { %s3887_s28 = scalar_lea.vmem %s4332_s13, 1024  ;;  %s4065_s19 = smov [#allocation7]  }
  0x8f   : > { %p3888_p12 = scmp.ne.s32.totalorder %s4332_s13, %s3887_s28  ;;  %s3892_s26 = sshll.u32 %s4065_s19, 4  ;;  %s3893_s26 = int_to_ptr.vmem [resolvable:$false] %s3892_s26 }
  0x90   : > { %s3894_s1 = scalar_lea.vmem %s3893_s26, 2048  ;;  %p3895_p11 = scmp.lt.s32.totalorder %s4332_s13, %s3893_s26 }
  0x91   : > { %p3890_p4 = pnand %p3888_p12, %p4956_p8  ;;  %p3896_p6 = scmp.lt.s32.totalorder %s3894_s1, %s3887_s28 }
  0x93   : > { %p3891_p5 = pneg %p3890_p4  ;;  %p3897_p3 = por %p3896_p6, %p3895_p11 }
  0x95   : > { %p3898_p9 = pnand %p3897_p3, %p3891_p5 }
  0x97   : > { %3901 = shalt.err (!%p3898_p9)
}
  0x98   : > { %p4957_p7 = scmp.ne.s32.totalorder %s4947_s27, 0  ;;  %s4387_s14 = scalar_lea.hbm %s4903_s10, %s4317_s23 }
  0x99   : > { %s626_s11 = scalar_lea.vmem [#allocation10], %s4314_s21  ;;  %s3902_s20 = scalar_lea.hbm %s4387_s14, 1024 }
  0x9a   : > { %3532 = dma.hbm_to_vmem [thread:$0]  (!%p4957_p7), %s4329_s17, 1024, %s4332_s13, %s4223_s18, %s4063_s7, %s4063_s7, %s4064_s25  }
  0x9b   : > { %s633_s29 = sshll.u32 %s626_s11, 4  ;;  %p3903_p10 = scmp.ne.s32.totalorder %s4387_s14, %s3902_s20  ;;  %s4390_s29 = int_to_ptr.vmem [resolvable:$true] %s633_s29 }
  0x9c   : > { %s3907_s17 = scalar_lea.hbm %s4903_s10, 2048  ;;  %p3908_p2 = scmp.lt.u32.totalorder %s4387_s14, %s4903_s10 }
  0x9d   : > { %p3905_p13 = pnand %p3903_p10, %p4956_p8  ;;  %p3909_p0 = scmp.lt.u32.totalorder %s3907_s17, %s3902_s20 }
  0x9e   : > { %p3911_p4 = scmp.lt.u32.totalorder %s3902_s20, %s4387_s14 }
  0x9f   : > { %p3906_p1 = pneg %p3905_p13  ;;  %p3910_p12 = por %p3909_p0, %p3908_p2 }
  0xa1   : > { %p3912_p5 = por %p3911_p4, %p3910_p12 }
  0xa3   : > { %p3913_p11 = pnand %p3912_p5, %p3906_p1 }
  0xa5   : > { %3916 = shalt.err (!%p3913_p11)
}
  0xa6   : > { %s3917_s25 = scalar_lea.vmem %s4390_s29, 1024  ;;  %s4066_s19 = smov [#allocation10]  }
  0xa7   : > { %p3918_p6 = scmp.ne.s32.totalorder %s4390_s29, %s3917_s25  ;;  %s3922_s26 = sshll.u32 %s4066_s19, 4  ;;  %s3923_s26 = int_to_ptr.vmem [resolvable:$false] %s3922_s26 }
  0xa8   : > { %s3924_s1 = scalar_lea.vmem %s3923_s26, 2048  ;;  %p3925_p10 = scmp.lt.s32.totalorder %s4390_s29, %s3923_s26 }
  0xa9   : > { %p3920_p3 = pnand %p3918_p6, %p4956_p8  ;;  %p3926_p13 = scmp.lt.s32.totalorder %s3924_s1, %s3917_s25 }
  0xab   : > { %p3921_p9 = pneg %p3920_p3  ;;  %p3927_p2 = por %p3926_p13, %p3925_p10 }
  0xad   : > { %p3928_p0 = pnand %p3927_p2, %p3921_p9 }
  0xaf   : > { %3931 = shalt.err (!%p3928_p0)
}
  0xb0   : > { %s4958_s3 = smov 4   ;;  %s4959_s8 = smov 64  }
  0xb1   : > { %3538 = dma.hbm_to_vmem [thread:$0]  (!%p4957_p7), %s4387_s14, 1024, %s4390_s29, %s4264_s9, %s4959_s8, %s4959_s8, %s4958_s3  }
  0xb2   : > { %s4421_s28 = scalar_lea.hbm %s4905_s12, %s4317_s23  ;;  %s653_s18 = scalar_lea.vmem [#allocation11], %s4314_s21 }
  0xb3   : > { %s660_s17 = sshll.u32 %s653_s18, 4  ;;  %s650_s13 = scalar_lea.sflag [#allocation12], %s4203_s0  ;;  %s4424_s17 = int_to_ptr.vmem [resolvable:$true] %s660_s17 }
  0xb4   : > { %s3932_s7 = scalar_lea.hbm %s4421_s28, 1024  ;;  %s3937_s29 = scalar_lea.hbm %s4905_s12, 2048 }
  0xb5   : > { %p3933_p1 = scmp.ne.s32.totalorder %s4421_s28, %s3932_s7  ;;  %p3938_p5 = scmp.lt.u32.totalorder %s4421_s28, %s4905_s12 }
  0xb6   : > { %p3939_p11 = scmp.lt.u32.totalorder %s3937_s29, %s3932_s7  ;;  %p3941_p3 = scmp.lt.u32.totalorder %s3932_s7, %s4421_s28 }
  0xb7   : > { %p3935_p12 = pnand %p3933_p1, %p4956_p8 }
  0xb8   : > { %p3940_p6 = por %p3939_p11, %p3938_p5 }
  0xb9   : > { %p3936_p4 = pneg %p3935_p12 }
  0xba   : > { %p3942_p9 = por %p3941_p3, %p3940_p6 }
  0xbc   : > { %p3943_p10 = pnand %p3942_p9, %p3936_p4 }
  0xbe   : > { %3946 = shalt.err (!%p3943_p10)
}
  0xbf   : > { %s3947_s21 = scalar_lea.vmem %s4424_s17, 1024  ;;  %s4067_s19 = smov [#allocation11]  }
  0xc0   : > { %p3948_p13 = scmp.ne.s32.totalorder %s4424_s17, %s3947_s21  ;;  %s3952_s26 = sshll.u32 %s4067_s19, 4  ;;  %s3953_s26 = int_to_ptr.vmem [resolvable:$false] %s3952_s26 }
  0xc1   : > { %s3954_s1 = scalar_lea.vmem %s3953_s26, 2048  ;;  %p3955_p1 = scmp.lt.s32.totalorder %s4424_s17, %s3953_s26 }
  0xc2   : > { %p3950_p2 = pnand %p3948_p13, %p4956_p8  ;;  %p3956_p12 = scmp.lt.s32.totalorder %s3954_s1, %s3947_s21 }
  0xc4   : > { %p3951_p0 = pneg %p3950_p2  ;;  %p3957_p5 = por %p3956_p12, %p3955_p1 }
  0xc6   : > { %p3958_p11 = pnand %p3957_p5, %p3951_p0 }
  0xc8   : > { %3961 = shalt.err (!%p3958_p11)
}
  0xc9   : > { %3541 = dma.hbm_to_vmem [thread:$0]  (!%p4957_p7), %s4421_s28, 1024, %s4424_s17, %s650_s13, %s4959_s8, %s4959_s8, %s4958_s3  }
  0xca   : > { %p4960_p8 = scmp.ne.s32.totalorder %s4953_s30, 0 }
  0xcb   : > { %p4961_p4 = scmp.eq.s32.totalorder (!%p4960_p8), %s4292_s15, 0 }
  0xcc   : > { %678 = sbr.rel (%p4960_p8) target bundleno = 4637 (0x121d), region = 84 }
  0xd3   : > { %4013 = dma.done.wait (%p4961_p4), [#allocation3], 256   ;;  %p4962_p6 = pmov %p4961_p4 }
  0xd4   : > { %s684_s27 = sand.u32 1, %s4292_s15   ;;  %s686_s16 = sand.u32 1, %s4038_s22  }
  0xd5   : > { %4015 = vsyncadd (%p4962_p6), [#allocation3], 4294967040  ;;  %s3503_s11 = smul.u32 384, %s686_s16  ;;  %s685_s20 = scalar_lea.sflag [#allocation6], %s684_s27 }
  0xd6   : > { %p4963_p3 = scmp.ne.s32.totalorder %s4952_s4, 0 }
  0xd7   : > { %s4461_s0 = scalar_lea.vmem [#allocation5], %s3503_s11 }
  0xd8   : > { %4017 = dma.done.wait (%p4963_p3), %s685_s20, 7168  }
  0xd9   : > { %4019 = vsyncadd (%p4963_p3), %s685_s20, 4294960128  ;;  %s3165_s30 = sshll.u32 %s686_s16, 6  ;;  %s3166_s3 = sshll.u32 %s686_s16, 7 }
  0xda   : > { %s4467_s8 = scalar_lea.vmem [#allocation7], %s3165_s30  ;;  %s703_s28 = scalar_lea.sflag [#allocation9], %s684_s27 }
  0xdb   : > { %s4469_s18 = scalar_lea.vmem [#allocation8], %s3166_s3 }
  0xdc   : > { %4021 = dma.done.wait (%p4963_p3), %s703_s28, 3072  }
  0xdd   : > { %4023 = vsyncadd (%p4963_p3), %s703_s28, 4294964224  ;;  %s4475_s17 = scalar_lea.vmem [#allocation10], %s3165_s30  ;;  %s721_s13 = scalar_lea.sflag [#allocation12], %s686_s16 }
  0xde   : > { %s4477_s7 = scalar_lea.vmem [#allocation11], %s3165_s30 }
  0xdf   : > { %4025 = dma.done.wait (%p4963_p3), %s721_s13, 1024  }
  0xe0   : > { %4027 = vsyncadd (%p4963_p3), %s721_s13, 4294966272  ;;  %p842_p7 = scmp.eq.s32.totalorder %s4046_s24, 0  ;;  %v843_v1 = vld [vmem:[#allocation2] sm:$0xff]  ;;  %v845_v2 = vld [vmem:[#allocation13] sm:$0xff]  ;;  %v4068_v41 = vmov 0   ;;  %p819_p9 = scmp.lt.s32.totalorder %s4046_s24, 1 }
  0xe1   : > { %v844_v3 = vld [vmem:[#allocation2 + $0x8] sm:$0xff]  ;;  %v846_v5 = vld [vmem:[#allocation13 + $0x8] sm:$0xff]  ;;  %1214 = vmatprep.mubr.bf16.mxu0 %v4068_v41  ;;  %1257 = vmatprep.mubr.bf16.mxu1 %v4068_v41  ;;  %s4964_s19 = sld [smem:[#allocation26_spill]]  ;;  %s4965_s16 = sld [smem:[#allocation25_spill]]  ;;  %vm1328_vm1 = vcmask 1041409   ;;  %vm1371_vm2 = vcmask 523264  }
  0xe2   : > { %s847_s9 = scalar_select %p842_p7, 1, 0  ;;  %v3620_v7 = vld [vmem:[%s4461_s0 + $0x4] ss:$24 sps:$4 sm:$0xff]   ;;  %v3624_v9 = vld [vmem:[%s4461_s0] ss:$24 sps:$4 sm:$0xff]  }
  0xe3   : > { %v3622_v8 = vld [vmem:[%s4461_s0 + $0xc] ss:$24 sps:$4 sm:$0xff]   ;;  %v3625_v10 = vld [vmem:[%s4461_s0 + $0x8] ss:$24 sps:$4 sm:$0xff]   ;;  %v3628_v12 = vld [vmem:[%s4461_s0 + $0x3c] ss:$24 sps:$4 sm:$0xff]   ;;  %1182 = vmatprep.subr.bf16.mxu0 %v3620_v7 }
  0xe4   : > { %v848_v0 = vstv %s847_s9  ;;  %v3626_v11 = vld [vmem:[%s4461_s0 + $0x34] ss:$24 sps:$4 sm:$0xff]   ;;  %1225 = vmatprep.subr.bf16.mxu1 %v3622_v8  ;;  %v3630_v13 = vld [vmem:[%s4461_s0 + $0x30] ss:$24 sps:$4 sm:$0xff]   ;;  %1183 = vmatpush1.bf16.msra.mxu0 %v3624_v9  ;;  %v3632_v23 = vld [vmem:[%s4461_s0 + $0x64] ss:$24 sps:$4 sm:$0xff]  }
  0xe5   : > { %vm849_vm0 = vcmp.eq.s32.totalorder %v848_v0, 1  ;;  %v3631_v14 = vld [vmem:[%s4461_s0 + $0x38] ss:$24 sps:$4 sm:$0xff]   ;;  %1226 = vmatpush1.bf16.msra.mxu1 %v3625_v10  ;;  %1184 = vmatprep.subr.bf16.mxu0 %v3626_v11  ;;  %v3634_v24 = vld [vmem:[%s4461_s0 + $0x6c] ss:$24 sps:$4 sm:$0xff]   ;;  %s4538_s4 = scalar_select %p819_p9, %s4046_s24, 1 }
  0xe6   : > { %v4484_v4 = vsel %vm849_vm0, %v843_v1, %v845_v2  ;;  %v4487_v6 = vsel %vm849_vm0, %v844_v3, %v846_v5  ;;  %1227 = vmatprep.subr.bf16.mxu1 %v3628_v12  ;;  %v3636_v25 = vld [vmem:[%s4461_s0 + $0x60] ss:$24 sps:$4 sm:$0xff]   ;;  %v3638_v27 = vld [vmem:[%s4461_s0 + $0x94] ss:$24 sps:$4 sm:$0xff]   ;;  %v3642_v29 = vld [vmem:[%s4461_s0 + $0x90] ss:$24 sps:$4 sm:$0xff]  }
  0xe7   : > { %854 = vadd.xlane.f32.xlu0 %v4484_v4  ;;  %v3637_v26 = vld [vmem:[%s4461_s0 + $0x68] ss:$24 sps:$4 sm:$0xff]   ;;  %v3640_v28 = vld [vmem:[%s4461_s0 + $0x9c] ss:$24 sps:$4 sm:$0xff]   ;;  %v3643_v30 = vld [vmem:[%s4461_s0 + $0x98] ss:$24 sps:$4 sm:$0xff]   ;;  %s821_s23 = scalar_lea.vmem %s4895_s2, %s4538_s4  ;;  %s824_s26 = scalar_lea.vmem %s4964_s19, %s4538_s4 }
  0xe8   : > { %1185 = vmatpush1.bf16.msra.mxu0 %v3630_v13  ;;  %v3644_v31 = vld [vmem:[%s4461_s0 + $0xc4] ss:$24 sps:$4 sm:$0xff]   ;;  %v3648_v33 = vld [vmem:[%s4461_s0 + $0xc0] ss:$24 sps:$4 sm:$0xff]   ;;  %v3650_v35 = vld [vmem:[%s4461_s0 + $0xf4] ss:$24 sps:$4 sm:$0xff]  }
  0xe9   : > { %1228 = vmatpush1.bf16.msra.mxu1 %v3631_v14  ;;  %1186 = vmatprep.subr.bf16.mxu0 %v3632_v23  ;;  %v3646_v32 = vld [vmem:[%s4461_s0 + $0xcc] ss:$24 sps:$4 sm:$0xff]   ;;  %v3649_v34 = vld [vmem:[%s4461_s0 + $0xc8] ss:$24 sps:$4 sm:$0xff]   ;;  %v3652_v36 = vld [vmem:[%s4461_s0 + $0xfc] ss:$24 sps:$4 sm:$0xff]  }
  0xea   : > { %1229 = vmatprep.subr.bf16.mxu1 %v3634_v24  ;;  %v3654_v37 = vld [vmem:[%s4461_s0 + $0xf0] ss:$24 sps:$4 sm:$0xff]   ;;  %v3656_v39 = vld [vmem:[%s4461_s0 + $0x124] ss:$24 sps:$4 sm:$0xff]   ;;  %v3660_v42 = vld [vmem:[%s4461_s0 + $0x120] ss:$24 sps:$4 sm:$0xff]  }
  0xeb   : > { %856 = vadd.xlane.f32.xlu0 %v4487_v6  ;;  %v3655_v38 = vld [vmem:[%s4461_s0 + $0xf8] ss:$24 sps:$4 sm:$0xff]   ;;  %v3658_v40 = vld [vmem:[%s4461_s0 + $0x12c] ss:$24 sps:$4 sm:$0xff]   ;;  %v3661_v43 = vld [vmem:[%s4461_s0 + $0x128] ss:$24 sps:$4 sm:$0xff]  }
  0xec   : > { %1187 = vmatpush1.bf16.msra.mxu0 %v3636_v25  ;;  %v3662_v44 = vld [vmem:[%s4461_s0 + $0x154] ss:$24 sps:$4 sm:$0xff]   ;;  %v3666_v46 = vld [vmem:[%s4461_s0 + $0x150] ss:$24 sps:$4 sm:$0xff]   ;;  %v3676_v9 = vld [vmem:[%s4461_s0 + $0x44] ss:$24 sps:$4 sm:$0xff]  }
  0xed   : > { %1230 = vmatpush1.bf16.msra.mxu1 %v3637_v26  ;;  %1188 = vmatprep.subr.bf16.mxu0 %v3638_v27  ;;  %v3664_v45 = vld [vmem:[%s4461_s0 + $0x15c] ss:$24 sps:$4 sm:$0xff]   ;;  %v3667_v47 = vld [vmem:[%s4461_s0 + $0x158] ss:$24 sps:$4 sm:$0xff]   ;;  %v3673_v49 = vld [vmem:[%s4467_s8 + $0x4] ss:$8 sps:$4 sm:$0xff]  }
  0xee   : > { %1231 = vmatprep.subr.bf16.mxu1 %v3640_v28  ;;  %v3670_v48 = vld [vmem:[%s4461_s0 + $0x14] ss:$24 sps:$4 sm:$0xff]   ;;  %v3169_v58 = vld [vmem:[%s821_s23] ss:$0 sm:$0xff]  ;;  %v1312_v0 = vld [vmem:[%s4965_s16 + $0x1] sm:$0x1] }
  0xef   : > { %v3170_v62 = vld [vmem:[%s824_s26] ss:$0 sm:$0xff]  ;;  %v3671_v5 = vld [vmem:[%s4467_s8] ss:$8 sps:$4 sm:$0xff]   ;;  %v1314_v7 = vpack.c.bf16 %v1312_v0, %v1312_v0  ;;  %v3679_v10 = vld [vmem:[%s4467_s8 + $0x14] ss:$8 sps:$4 sm:$0xff]  }
  0xf0   : > { %1189 = vmatpush1.bf16.msra.mxu0 %v3642_v29  ;;  %v3668_v3 = vld [vmem:[%s4461_s0 + $0x10] ss:$24 sps:$4 sm:$0xff]   ;;  %v3674_v12 = vld [vmem:[%s4461_s0 + $0x40] ss:$24 sps:$4 sm:$0xff]   ;;  %v3691_v23 = vld [vmem:[%s4467_s8 + $0x34] ss:$8 sps:$4 sm:$0xff]  }
  0xf1   : > { %1232 = vmatpush1.bf16.msra.mxu1 %v3643_v30  ;;  %1190 = vmatprep.subr.bf16.mxu0 %v3644_v31  ;;  %v1311_v11 = vld [vmem:[%s4965_s16] sm:$0x1]  ;;  %v3686_v24 = vld [vmem:[%s4461_s0 + $0xa0] ss:$24 sps:$4 sm:$0xff]   ;;  %v3694_v27 = vld [vmem:[%s4461_s0 + $0xd4] ss:$24 sps:$4 sm:$0xff]  }
  0xf2   : > { %1233 = vmatprep.subr.bf16.mxu1 %v3646_v32  ;;  %v3677_v13 = vld [vmem:[%s4467_s8 + $0x10] ss:$8 sps:$4 sm:$0xff]   ;;  %v1313_v14 = vpack.c.bf16 %v1311_v11, %v1311_v11  ;;  %v3697_v30 = vld [vmem:[%s4461_s0 + $0x104] ss:$24 sps:$4 sm:$0xff]   ;;  %v3700_v32 = vld [vmem:[%s4461_s0 + $0x134] ss:$24 sps:$4 sm:$0xff]  }
  0xf3   : > { %v3689_v25 = vld [vmem:[%s4467_s8 + $0x30] ss:$8 sps:$4 sm:$0xff]   ;;  %vm4070_vm3 = vmmov 0   ;;  %vm1599_vm4 = vcmask 1043456   ;;  %vm1571_vm5 = vcmask 64512   ;;  %s4967_s9 = sld [smem:[#allocation30_spill]] }
  0xf4   : > { %1191 = vmatpush1.bf16.msra.mxu0 %v3648_v33  ;;  %v3692_v29 = vld [vmem:[%s4461_s0 + $0xd0] ss:$24 sps:$4 sm:$0xff]   ;;  %v3695_v31 = vld [vmem:[%s4461_s0 + $0x100] ss:$24 sps:$4 sm:$0xff]   ;;  %s4968_s23 = sld [smem:[#allocation31_spill]]  ;;  %s4969_s26 = sld [smem:[#allocation32_spill]] }
  0xf5   : > { %1234 = vmatpush1.bf16.msra.mxu1 %v3649_v34  ;;  %1192 = vmatprep.subr.bf16.mxu0 %v3650_v35  ;;  %v3698_v33 = vld [vmem:[%s4461_s0 + $0x130] ss:$24 sps:$4 sm:$0xff]   ;;  %v3703_v34 = vld [vmem:[%s4461_s0 + $0x164] ss:$24 sps:$4 sm:$0xff]   ;;  %v3701_v35 = vld [vmem:[%s4461_s0 + $0x160] ss:$24 sps:$4 sm:$0xff]  }
  0xf6   : > { %1235 = vmatprep.subr.bf16.mxu1 %v3652_v36  ;;  %v4069_v36 = vmov 0.0   ;;  %s4970_s11 = sld [smem:[#allocation33_spill]]  ;;  %p3281_p10 = scmp.ge.s32.totalorder %s4046_s24, 1 }
  0xf8   : > { %1193 = vmatpush1.bf16.msra.mxu0 %v3654_v37 }
  0xf9   : > { %1236 = vmatpush1.bf16.msra.mxu1 %v3655_v38  ;;  %1194 = vmatprep.subr.bf16.mxu0 %v3656_v39  ;;  %s830_s14 = scalar_lea.vmem %s4967_s9, %s4538_s4 }
  0xfa   : > { %1237 = vmatprep.subr.bf16.mxu1 %v3658_v40  ;;  %s833_s25 = scalar_lea.vmem %s4968_s23, %s4538_s4  ;;  %s836_s1 = scalar_lea.vmem %s4969_s26, %s4538_s4 }
  0xfc   : > { %1195 = vmatpush1.bf16.msra.mxu0 %v3660_v42  ;;  %s839_s20 = scalar_lea.vmem %s4970_s11, %s4538_s4 }
  0xfd   : > { %1238 = vmatpush1.bf16.msra.mxu1 %v3661_v43  ;;  %1196 = vmatprep.subr.bf16.mxu0 %v3662_v44 }
  0xfe   : > { %1239 = vmatprep.subr.bf16.mxu1 %v3664_v45 }
 0x100   : > { %1197 = vmatpush1.bf16.msra.mxu0 %v3666_v46 }
 0x101   : > { %1240 = vmatpush1.bf16.msra.mxu1 %v3667_v47  ;;  %1268 = vmatprep.subr.bf16.mxu0 %v3670_v48  ;;  %v4071_v47 = vmov 1966171168  }
 0x102   : > { %1375 = vmatprep.subr.bf16.mxu1 %v3673_v49  ;;  %v1420_v48 = vunpack.c.l.s4 %v4071_v47  ;;  %v1422_v49 = vlaneseq }
 0x174   : > { %v855_v15 = vpop.xlane.xlu0 %854 }
 0x175   : > { %v859_v16 = vmul.f32 0.0078125, %v855_v15  ;;  %v1326_v15 = vunpack.c.l.b16 %v1314_v7 }
 0x177   : > { %v4499_v17 = vsub.f32 %v4484_v4, %v859_v16  ;;  %v3682_v16 = vld [vmem:[%s4461_s0 + $0x74] ss:$24 sps:$4 sm:$0xff]  }
 0x178   : > { %v857_v18 = vpop.xlane.xlu0 %856 }
 0x179   : > { %v860_v19 = vmul.f32 0.0078125, %v857_v18  ;;  %v863_v20 = vmul.f32 %v4499_v17, %v4499_v17  ;;  %v3680_v18 = vld [vmem:[%s4461_s0 + $0x70] ss:$24 sps:$4 sm:$0xff]  }
 0x17b   : > { %v4504_v21 = vsub.f32 %v4487_v6, %v860_v19  ;;  %865 = vadd.xlane.f32.xlu1 %v863_v20  ;;  %v3683_v19 = vld [vmem:[%s4467_s8 + $0x20] ss:$8 sps:$4 sm:$0xff]   ;;  %v1325_v20 = vunpack.c.l.b16 %v1313_v14 }
 0x17d   : > { %v864_v22 = vmul.f32 %v4504_v21, %v4504_v21 }
 0x17f   : > { %867 = vadd.xlane.f32.xlu1 %v864_v22  ;;  %v3688_v22 = vld [vmem:[%s4461_s0 + $0xa4] ss:$24 sps:$4 sm:$0xff]   ;;  %s4072_s0 = smov 64  }
 0x208   : > { %v866_v50 = vpop.xlane.xlu1 %865 }
 0x209   : > { %v869_v51 = vmul.f32 0.0078125, %v866_v50  ;;  %v1421_v50 = vunpack.c.0.s8 %v1420_v48 }
 0x20b   : > { %v871_v52 = vadd.f32 1e-05, %v869_v51  ;;  %v1423_v51 = vshrl.u32 %v1422_v49, 7 }
 0x20c   : > { %v868_v53 = vpop.xlane.xlu1 %867 }
 0x20d   : > { %3736 = vrsqrt.f32 %v871_v52  ;;  %v870_v54 = vmul.f32 0.0078125, %v868_v53  ;;  %v1424_v53 = vsub.s32 %v1421_v50, %v1423_v51 }
 0x20f   : > { %v872_v55 = vadd.f32 1e-05, %v870_v54 }
 0x211   : > { %3738 = vrsqrt.f32 %v872_v55 }
 0x217   : > { %v3737_v56 = vpop.eup %3736 }
 0x218   : > { %v875_v57 = vmul.f32 %v3737_v56, %v4499_v17  ;;  %v3685_v17 = vld [vmem:[%s4467_s8 + $0x24] ss:$8 sps:$4 sm:$0xff]   ;;  %s4966_s8 = sld [smem:[#allocation29_spill]] }
 0x21a   : > { %v883_v61 = vmul.f32 %v3169_v58, %v875_v57 }
 0x21b   : > { %v3739_v59 = vpop.eup %3738 }
 0x21c   : > { %v876_v60 = vmul.f32 %v3739_v59, %v4504_v21  ;;  %v891_v1 = vadd.f32 %v3170_v62, %v883_v61  ;;  %v1327_v21 = vrot.slane %v1326_v15, 7  ;;  %v1443_v59 = vsub.s32 0, %v1423_v51 }
 0x21e   : > { %v884_v63 = vmul.f32 %v3169_v58, %v876_v60  ;;  %v1329_v26 = vsel %vm1328_vm1, %v1327_v21, %v1325_v20  ;;  %v1447_v60 = vsub.s32 1, %v1423_v51  ;;  %s827_s28 = scalar_lea.vmem %s4966_s8, %s4538_s4 }
 0x21f   : > { %v1330_v28 = vpack.c.b16 %v1329_v26, %v1329_v26 }
 0x220   : > { %v892_v2 = vadd.f32 %v3170_v62, %v884_v63 }
 0x222   : > { %v893_v8 = vpack.c.bf16 %v892_v2, %v891_v1 }
 0x224   : > { %1215 = vmatmul.mubr.bf16.vlgmr.msra.gmra.mrb[0].mxu0 %v893_v8  ;;  %1258 = vmatmul.mubr.bf16.vlgmr.msra.gmra.mrb[0].mxu1 %v893_v8 }
 0x225   : > { %1269 = vmatpush1.bf16.msra.mxu0 %v3668_v3  ;;  %1376 = vmatpush1.bf16.msra.mxu1 %v3671_v5 }
 0x226   : > { %1270 = vmatprep.subr.bf16.mxu0 %v3676_v9  ;;  %1377 = vmatprep.subr.bf16.mxu1 %v3679_v10 }
 0x227   : > { %1407 = vmatprep.mubr.bf16.mxu1 %v4068_v41  ;;  %1300 = vmatprep.mubr.bf16.mxu0 %v4068_v41 }
 0x229   : > { %1271 = vmatpush1.bf16.msra.mxu0 %v3674_v12  ;;  %1378 = vmatpush1.bf16.msra.mxu1 %v3677_v13 }
 0x22a   : > { %1272 = vmatprep.subr.bf16.mxu0 %v3682_v16  ;;  %1379 = vmatprep.subr.bf16.mxu1 %v3685_v17 }
 0x22d   : > { %1273 = vmatpush1.bf16.msra.mxu0 %v3680_v18  ;;  %1380 = vmatpush1.bf16.msra.mxu1 %v3683_v19 }
 0x22e   : > { %1274 = vmatprep.subr.bf16.mxu0 %v3688_v22  ;;  %1381 = vmatprep.subr.bf16.mxu1 %v3691_v23 }
 0x231   : > { %1275 = vmatpush1.bf16.msra.mxu0 %v3686_v24  ;;  %1382 = vmatpush1.bf16.msra.mxu1 %v3689_v25 }
 0x232   : > { %1276 = vmatprep.subr.bf16.mxu0 %v3694_v27  ;;  %3365 = vmatprep.subr.bf16.mxu1 %v4069_v36 }
 0x234   : > { %3227 = vmatmul.mubr.msk.bf16.vlgmr.msra.gmra.mrb[4].mxu1 %vm1371_vm2, %v1330_v28 }
 0x235   : > { %1277 = vmatpush1.bf16.msra.mxu0 %v3692_v29  ;;  %3367 = vmatprep.mubr.msk.bf16.mxu1 %vm4070_vm3, %v4069_v36 }
 0x236   : > { %1278 = vmatprep.subr.bf16.mxu0 %v3697_v30 }
 0x239   : > { %1279 = vmatpush1.bf16.msra.mxu0 %v3695_v31 }
 0x23a   : > { %1280 = vmatprep.subr.bf16.mxu0 %v3700_v32 }
 0x23d   : > { %1281 = vmatpush1.bf16.msra.mxu0 %v3698_v33 }
 0x23e   : > { %1282 = vmatprep.subr.bf16.mxu0 %v3703_v34 }
 0x241   : > { %1283 = vmatpush1.bf16.msra.mxu0 %v3701_v35 }
 0x242   : > { %3401 = vmatprep.subr.bf16.mxu0 %v4069_v36 }
 0x244   : > { %1301 = vmatmul.mubr.bf16.vlgmr.msra.gmra.mrb[4].mxu0 %v893_v8 }
 0x245   : > { %3403 = vmatprep.mubr.msk.bf16.mxu0 %vm4070_vm3, %v4069_v36 }
 0x2f7   : > { %v1216_v37 = vpop.f32.mrb[0].mxu0  ;;  %v1259_v38 = vpop.f32.mrb[0].mxu1 }
 0x2f8   : > { %v4587_v39 = vpack.c.bf16 %v1259_v38, %v1259_v38  ;;  %v1218_v40 = vpop.f32.mrb[1].mxu0  ;;  %v4589_v41 = vpop.f32.mrb[1].mxu1 }
 0x2f9   : > { %v1220_v42 = vpop.f32.mrb[2].mxu0  ;;  %v1263_v43 = vpop.f32.mrb[2].mxu1 }
 0x2fa   : > { %v1481_v44 = vsel %vm1371_vm2, %v4587_v39, 0  ;;  %v1222_v45 = vpop.f32.mrb[3].mxu0  ;;  %v4593_v46 = vpop.f32.mrb[3].mxu1  ;;  %v1471_v2 = vpack.c.bf16 %v1263_v43, %v1263_v43 }
 0x2fb   : > { %3366 = vmatpush3.bf16.xpose.msra.mxu1 %v1481_v44 }
 0x2fc   : > { %3371 = vmatprep.subr.bf16.mxu1 %v4069_v36  ;;  %v1527_v12 = vsel %vm1371_vm2, %v1471_v2, 0 }
 0x307   : > { %v1409_v52 = vpop.f32.mrb[4].mxu1 }
 0x308   : > { %v1411_v54 = vpop.f32.mrb[5].mxu1 }
 0x309   : > { %v1418_v55 = vcombine.low %v1409_v52, %v1411_v54  ;;  %v1413_v56 = vpop.f32.mrb[6].mxu1 }
 0x30a   : > { %v1414_v57 = vpop.f32.mrb[7].mxu1 }
 0x30b   : > { %v1425_v58 = vrot.slane %v1418_v55, %v1424_v53 }
 0x30d   : > { %v1426_v61 = vcombine.high %v1425_v58, %v1425_v58  ;;  %v1433_v62 = vrot.slane %v1425_v58, %v1424_v53 }
 0x30f   : > { %v1440_v63 = vrot.slane %v1426_v61, %v1424_v53  ;;  %v1444_v0 = vrot.slane %v1433_v62, %v1443_v59  ;;  %v1448_v1 = vrot.slane %v1433_v62, %v1447_v60 }
 0x311   : > { %v1452_v3 = vrot.slane %v1440_v63, %v1443_v59  ;;  %v1456_v5 = vrot.slane %v1440_v63, %v1447_v60  ;;  %v1461_v7 = vadd.f32 %v1444_v0, %v1216_v37  ;;  %v4596_v8 = vadd.f32 %v1448_v1, %v1218_v40 }
 0x313   : > { %v1463_v9 = vadd.f32 %v1452_v3, %v1220_v42  ;;  %v4598_v10 = vadd.f32 %v1456_v5, %v1222_v45  ;;  %v1465_v11 = vpack.c.bf16 %v1461_v7, %v1461_v7 }
 0x315   : > { %3368 = vmatmul.mubr.msk.bf16.vlgmr.msra.gmra.mrb[8].mxu1 %vm1371_vm2, %v1465_v11  ;;  %v1467_v18 = vpack.c.bf16 %v1463_v9, %v1463_v9 }
 0x316   : > { %3372 = vmatpush3.bf16.xpose.msra.mxu1 %v1527_v12  ;;  %3373 = vmatprep.mubr.msk.bf16.mxu1 %vm4070_vm3, %v4069_v36 }
 0x317   : > { %v1302_v13 = vpop.f32.mrb[4].mxu0  ;;  %3377 = vmatprep.subr.bf16.mxu1 %v4069_v36 }
 0x318   : > { %v4605_v14 = vpop.f32.mrb[5].mxu0  ;;  %v4607_v15 = vpack.c.bf16 %v1302_v13, %v1302_v13 }
 0x319   : > { %v1306_v16 = vpop.f32.mrb[6].mxu0 }
 0x31a   : > { %v4609_v17 = vpop.f32.mrb[7].mxu0  ;;  %v1601_v19 = vsel %vm1599_vm4, %v4607_v15, 0  ;;  %v1475_v49 = vpack.c.bf16 %v1306_v16, %v1306_v16 }
 0x31c   : > { %v1647_v52 = vsel %vm1599_vm4, %v1475_v49, 0 }
 0x31d   : > { %3374 = vmatmul.mubr.msk.bf16.vlgmr.msra.gmra.mrb[12].mxu1 %vm1371_vm2, %v1467_v18 }
 0x31e   : > { %3378 = vmatpush3.bf16.msra.mxu1 %v1601_v19  ;;  %3379 = vmatprep.mubr.msk.bf16.mxu1 %vm4070_vm3, %v4069_v36 }
 0x31f   : > { %3383 = vmatprep.subr.bf16.mxu1 %v4069_v36 }
 0x3e8   : > { %v1517_v20 = vpop.f32.mrb[8].mxu1 }
 0x3e9   : > { %v1569_v21 = vmul.f32 0.125, %v1517_v20  ;;  %v3369_v22 = vpop.f32.mrb[9].mxu1 }
 0x3ea   : > { %v1520_v23 = vpop.f32.mrb[10].mxu1 }
 0x3eb   : > { %v3370_v24 = vpop.f32.mrb[11].mxu1  ;;  %v1572_v25 = vsel %vm1571_vm5, %v1569_v21, -inf }
 0x3ec   : > { %1573 = vmax.xlane.f32.xlu0 %v1572_v25 }
 0x3f0   : > { %v1563_v26 = vpop.f32.mrb[12].mxu1 }
 0x3f1   : > { %v1570_v27 = vmul.f32 0.125, %v1563_v26  ;;  %v3375_v28 = vpop.f32.mrb[13].mxu1 }
 0x3f2   : > { %v1566_v29 = vpop.f32.mrb[14].mxu1 }
 0x3f3   : > { %v3376_v30 = vpop.f32.mrb[15].mxu1  ;;  %v1575_v31 = vsel %vm1571_vm5, %v1570_v27, -inf }
 0x3f4   : > { %1576 = vmax.xlane.f32.xlu1 %v1575_v31 }
 0x479   : > { %v1574_v32 = vpop.xlane.xlu0 %1573 }
 0x47a   : > { %v1578_v33 = vsub.f32 %v1569_v21, %v1574_v32 }
 0x47c   : > { %v1580_v34 = vmul.f32 1.442695, %v1578_v33 }
 0x47e   : > { %3740 = vpow2.f32 %v1580_v34 }
 0x481   : > { %v1577_v35 = vpop.xlane.xlu1 %1576 }
 0x482   : > { %v1579_v37 = vsub.f32 %v1570_v27, %v1577_v35 }
 0x484   : > { %v1582_v38 = vmul.f32 1.442695, %v1579_v37 }
 0x486   : > { %3742 = vpow2.f32 %v1582_v38 }
 0x488   : > { %v3741_v40 = vpop.eup %3740 }
 0x489   : > { %v1584_v42 = vsel %vm1571_vm5, %v3741_v40, 0.0 }
 0x48a   : > { %1585 = vadd.xlane.f32.xlu0 %v1584_v42 }
 0x490   : > { %v3743_v43 = vpop.eup %3742 }
 0x491   : > { %v1587_v44 = vsel %vm1571_vm5, %v3743_v43, 0.0 }
 0x492   : > { %1588 = vadd.xlane.f32.xlu1 %v1587_v44 }
 0x4a0   : > { %1693 = vrot.lane.b32.xlu0 %v4587_v39, %s4072_s0 }
 0x4a3   : > { %1690 = vrot.lane.b32.xlu1 %v1465_v11, %s4072_s0 }
 0x4a7   : > { %1745 = vrot.lane.b32.xlu1 %v1471_v2, %s4072_s0 }
 0x4ab   : > { %1742 = vrot.lane.b32.xlu1 %v1467_v18, %s4072_s0 }
 0x517   : > { %v1586_v45 = vpop.xlane.xlu0 %1585 }
 0x518   : > { %3744 = vrcp.f32 %v1586_v45 }
 0x51b   : > { %v1694_v54 = vpop.permute.xlu0 %1693 }
 0x51c   : > { %v1699_v57 = vsel %vm1371_vm2, %v1694_v54, 0 }
 0x51f   : > { %v1589_v47 = vpop.xlane.xlu1 %1588 }
 0x520   : > { %3746 = vrcp.f32 %v1589_v47  ;;  %v4662_v47 = vpack.c.bf16 %v4589_v41, %v4589_v41  ;;  %v4677_v41 = vpack.c.bf16 %v4605_v14, %v4605_v14 }
 0x522   : > { %v3745_v48 = vpop.eup %3744  ;;  %v2039_v54 = vsel %vm1599_vm4, %v4677_v41, 0 }
 0x523   : > { %v1592_v50 = vmul.f32 %v3745_v48, %v3741_v40  ;;  %v1691_v56 = vpop.permute.xlu1 %1690  ;;  %v1472_v48 = vpack.c.bf16 %v4593_v46, %v4593_v46  ;;  %v1466_v46 = vpack.c.bf16 %v4596_v8, %v4596_v8 }
 0x525   : > { %v1594_v51 = vpack.c.bf16 %v1592_v50, %v1592_v50  ;;  %v1921_v50 = vsel %vm1371_vm2, %v4662_v47, 0 }
 0x527   : > { %3380 = vmatmul.mubr.msk.bf16.vlgmr.msra.gmra.mrb[16].mxu1 %vm1571_vm5, %v1594_v51  ;;  %v1746_v58 = vpop.permute.xlu1 %1745 }
 0x528   : > { %3384 = vmatpush3.bf16.msra.mxu1 %v1647_v52  ;;  %3385 = vmatprep.mubr.msk.bf16.mxu1 %vm4070_vm3, %v4069_v36  ;;  %v1751_v59 = vsel %vm1371_vm2, %v1746_v58, 0  ;;  %v1967_v52 = vsel %vm1371_vm2, %v1472_v48, 0 }
 0x529   : > { %3389 = vmatprep.subr.bf16.mxu1 %v4069_v36 }
 0x52a   : > { %v3747_v39 = vpop.eup %3746 }
 0x52b   : > { %v1593_v53 = vmul.f32 %v3747_v39, %v3743_v43  ;;  %v1743_v60 = vpop.permute.xlu1 %1742  ;;  %v4684_v39 = vpack.c.bf16 %v4609_v17, %v4609_v17 }
 0x52d   : > { %v1595_v55 = vpack.c.bf16 %v1593_v53, %v1593_v53  ;;  %v1468_v53 = vpack.c.bf16 %v4598_v10, %v4598_v10  ;;  %v2085_v14 = vsel %vm1599_vm4, %v4684_v39, 0 }
 0x52f   : > { %3386 = vmatmul.mubr.msk.bf16.vlgmr.msra.gmra.mrb[20].mxu1 %vm1571_vm5, %v1595_v55 }
 0x530   : > { %3391 = vmatprep.mubr.msk.bf16.mxu1 %vm4070_vm3, %v4069_v36 }
 0x531   : > { %3390 = vmatpush3.bf16.xpose.msra.mxu1 %v1699_v57 }
 0x532   : > { %3395 = vmatprep.subr.bf16.mxu1 %v4069_v36 }
 0x538   : > { %3392 = vmatmul.mubr.msk.bf16.vlgmr.msra.gmra.mrb[24].mxu1 %vm1371_vm2, %v1691_v56 }
 0x539   : > { %3396 = vmatpush3.bf16.xpose.msra.mxu1 %v1751_v59  ;;  %3397 = vmatprep.mubr.msk.bf16.mxu1 %vm4070_vm3, %v4069_v36 }
 0x53a   : > { %3407 = vmatprep.subr.bf16.mxu1 %v4069_v36 }
 0x540   : > { %3398 = vmatmul.mubr.msk.bf16.vlgmr.msra.gmra.mrb[28].mxu1 %vm1371_vm2, %v1743_v60 }
 0x541   : > { %3409 = vmatprep.mubr.msk.bf16.mxu1 %vm4070_vm3, %v4069_v36 }
 0x5fa   : > { %v4644_v61 = vpop.f32.mrb[16].mxu1 }
 0x5fb   : > { %v3381_v62 = vpop.f32.mrb[17].mxu1 }
 0x5fc   : > { %v1640_v63 = vpop.f32.mrb[18].mxu1 }
 0x5fd   : > { %v3382_v0 = vpop.f32.mrb[19].mxu1 }
 0x602   : > { %v4646_v1 = vpop.f32.mrb[20].mxu1 }
 0x603   : > { %v3387_v2 = vpop.f32.mrb[21].mxu1 }
 0x604   : > { %v1686_v3 = vpop.f32.mrb[22].mxu1 }
 0x605   : > { %v3388_v5 = vpop.f32.mrb[23].mxu1 }
 0x60b   : > { %v1735_v7 = vpop.f32.mrb[24].mxu1 }
 0x60c   : > { %v1793_v9 = vmul.f32 0.125, %v1735_v7  ;;  %v3393_v11 = vpop.f32.mrb[25].mxu1 }
 0x60d   : > { %v1738_v12 = vpop.f32.mrb[26].mxu1 }
 0x60e   : > { %v3394_v13 = vpop.f32.mrb[27].mxu1  ;;  %v1795_v16 = vsel %vm1571_vm5, %v1793_v9, -inf }
 0x60f   : > { %1796 = vmax.xlane.f32.xlu0 %v1795_v16 }
 0x613   : > { %v1787_v18 = vpop.f32.mrb[28].mxu1 }
 0x614   : > { %v1794_v19 = vmul.f32 0.125, %v1787_v18  ;;  %v3399_v20 = vpop.f32.mrb[29].mxu1 }
 0x615   : > { %v1790_v21 = vpop.f32.mrb[30].mxu1 }
 0x616   : > { %v3400_v22 = vpop.f32.mrb[31].mxu1  ;;  %v1798_v23 = vsel %vm1571_vm5, %v1794_v19, -inf }
 0x617   : > { %1799 = vmax.xlane.f32.xlu1 %v1798_v23 }
 0x628   : > { %1869 = vrot.lane.b32.xlu1 %v1475_v49, %s4072_s0 }
 0x69c   : > { %v1797_v24 = vpop.xlane.xlu0 %1796 }
 0x69d   : > { %v1801_v25 = vsub.f32 %v1793_v9, %v1797_v24 }
 0x69f   : > { %v1803_v26 = vmul.f32 1.442695, %v1801_v25 }
 0x6a1   : > { %3748 = vpow2.f32 %v1803_v26 }
 0x6a4   : > { %v1800_v27 = vpop.xlane.xlu1 %1799 }
 0x6a5   : > { %v1802_v28 = vsub.f32 %v1794_v19, %v1800_v27 }
 0x6a7   : > { %v1805_v29 = vmul.f32 1.442695, %v1802_v28 }
 0x6a8   : > { %v1870_v30 = vpop.permute.xlu1 %1869 }
 0x6a9   : > { %3750 = vpow2.f32 %v1805_v29  ;;  %v1875_v31 = vsel %vm1599_vm4, %v1870_v30, 0 }
 0x6aa   : > { %3408 = vmatpush3.bf16.msra.mxu1 %v1875_v31 }
 0x6ab   : > { %v3749_v32 = vpop.eup %3748  ;;  %3419 = vmatprep.subr.bf16.mxu1 %v4069_v36 }
 0x6ac   : > { %v1807_v33 = vsel %vm1571_vm5, %v3749_v32, 0.0 }
 0x6ad   : > { %1808 = vadd.xlane.f32.xlu0 %v1807_v33 }
 0x6b3   : > { %v3751_v34 = vpop.eup %3750 }
 0x6b4   : > { %v1810_v35 = vsel %vm1571_vm5, %v3751_v34, 0.0 }
 0x6b5   : > { %1811 = vadd.xlane.f32.xlu0 %v1810_v35 }
 0x6cb   : > { %1820 = vrot.lane.b32.xlu0 %v4607_v15, %s4072_s0 }
 0x73a   : > { %v1809_v37 = vpop.xlane.xlu0 %1808 }
 0x73b   : > { %3752 = vrcp.f32 %v1809_v37 }
 0x742   : > { %v1812_v38 = vpop.xlane.xlu0 %1811 }
 0x743   : > { %3754 = vrcp.f32 %v1812_v38 }
 0x745   : > { %v3753_v40 = vpop.eup %3752 }
 0x746   : > { %v1815_v42 = vmul.f32 %v3753_v40, %v3749_v32  ;;  %v1821_v43 = vpop.permute.xlu0 %1820 }
 0x747   : > { %v1826_v44 = vsel %vm1599_vm4, %v1821_v43, 0 }
 0x748   : > { %3402 = vmatpush3.bf16.msra.mxu0 %v1826_v44  ;;  %v1817_v45 = vpack.c.bf16 %v1815_v42, %v1815_v42 }
 0x749   : > { %3413 = vmatprep.subr.bf16.mxu0 %v4069_v36 }
 0x74b   : > { %3404 = vmatmul.mubr.msk.bf16.vlgmr.msra.gmra.mrb[8].mxu0 %vm1571_vm5, %v1817_v45 }
 0x74c   : > { %3415 = vmatprep.mubr.msk.bf16.mxu0 %vm4070_vm3, %v4069_v36 }
 0x74d   : > { %v3755_v15 = vpop.eup %3754 }
 0x74e   : > { %v1816_v49 = vmul.f32 %v3755_v15, %v3751_v34 }
 0x750   : > { %v1818_v51 = vpack.c.bf16 %v1816_v49, %v1816_v49 }
 0x751   : > { %3414 = vmatpush3.bf16.xpose.msra.mxu0 %v1921_v50 }
 0x752   : > { %3410 = vmatmul.mubr.msk.bf16.vlgmr.msra.gmra.mrb[32].mxu1 %vm1571_vm5, %v1818_v51  ;;  %3425 = vmatprep.subr.bf16.mxu0 %v4069_v36 }
 0x753   : > { %3420 = vmatpush3.bf16.xpose.msra.mxu1 %v1967_v52  ;;  %3421 = vmatprep.mubr.msk.bf16.mxu1 %vm4070_vm3, %v4069_v36 }
 0x754   : > { %3431 = vmatprep.subr.bf16.mxu1 %v4069_v36 }
 0x758   : > { %3416 = vmatmul.mubr.msk.bf16.vlgmr.msra.gmra.mrb[12].mxu0 %vm1371_vm2, %v1466_v46 }
 0x759   : > { %3426 = vmatpush3.bf16.msra.mxu0 %v2039_v54  ;;  %3427 = vmatprep.mubr.msk.bf16.mxu0 %vm4070_vm3, %v4069_v36 }
 0x75a   : > { %3422 = vmatmul.mubr.msk.bf16.vlgmr.msra.gmra.mrb[36].mxu1 %vm1371_vm2, %v1468_v53  ;;  %3437 = vmatprep.subr.bf16.mxu0 %v4069_v36 }
 0x75b   : > { %3432 = vmatpush3.bf16.msra.mxu1 %v2085_v14  ;;  %3433 = vmatprep.mubr.msk.bf16.mxu1 %vm4070_vm3, %v4069_v36 }
 0x75c   : > { %3443 = vmatprep.subr.bf16.mxu1 %v4069_v36 }
 0x81e   : > { %v4700_v8 = vpop.f32.mrb[8].mxu0 }
 0x81f   : > { %v3405_v10 = vpop.f32.mrb[9].mxu0 }
 0x820   : > { %v1865_v17 = vpop.f32.mrb[10].mxu0 }
 0x821   : > { %v3406_v55 = vpop.f32.mrb[11].mxu0 }
 0x825   : > { %v4702_v56 = vpop.f32.mrb[32].mxu1 }
 0x826   : > { %v3615_v57 = vpack.i.bf16 %v4702_v56, %v4700_v8  ;;  %v3411_v58 = vpop.f32.mrb[33].mxu1 }
 0x827   : > { %v1914_v59 = vpop.f32.mrb[34].mxu1 }
 0x828   : > { %v3412_v60 = vpop.f32.mrb[35].mxu1 }
 0x82b   : > { %v1957_v62 = vpop.f32.mrb[12].mxu0 }
 0x82c   : > { %v2009_v63 = vmul.f32 0.125, %v1957_v62  ;;  %v3417_v0 = vpop.f32.mrb[13].mxu0 }
 0x82d   : > { %v1960_v2 = vpop.f32.mrb[14].mxu0  ;;  %v2003_v3 = vpop.f32.mrb[36].mxu1 }
 0x82e   : > { %v2010_v5 = vmul.f32 0.125, %v2003_v3  ;;  %v3418_v7 = vpop.f32.mrb[15].mxu0  ;;  %v3423_v9 = vpop.f32.mrb[37].mxu1  ;;  %v2011_v11 = vsel %vm1571_vm5, %v2009_v63, -inf }
 0x82f   : > { %v2006_v12 = vpop.f32.mrb[38].mxu1  ;;  %2012 = vmax.xlane.f32.xlu1 %v2011_v11 }
 0x830   : > { %v3424_v13 = vpop.f32.mrb[39].mxu1  ;;  %v2014_v16 = vsel %vm1571_vm5, %v2010_v5, -inf }
 0x831   : > { %2015 = vmax.xlane.f32.xlu0 %v2014_v16 }
 0x840   : > { %2183 = vrot.lane.b32.xlu1 %v1472_v48, %s4072_s0 }
 0x8bc   : > { %v2013_v18 = vpop.xlane.xlu1 %2012 }
 0x8bd   : > { %v2017_v19 = vsub.f32 %v2009_v63, %v2013_v18 }
 0x8be   : > { %v2016_v20 = vpop.xlane.xlu0 %2015 }
 0x8bf   : > { %v2019_v21 = vmul.f32 1.442695, %v2017_v19  ;;  %v2018_v22 = vsub.f32 %v2010_v5, %v2016_v20 }
 0x8c0   : > { %v2184_v28 = vpop.permute.xlu1 %2183 }
 0x8c1   : > { %3756 = vpow2.f32 %v2019_v21  ;;  %v2021_v23 = vmul.f32 1.442695, %v2018_v22  ;;  %v2189_v42 = vsel %vm1371_vm2, %v2184_v28, 0  ;;  %v3704_v28 = vld [vmem:[%s4469_s18 + $0x40] sm:$0xff]  }
 0x8c3   : > { %3758 = vpow2.f32 %v2021_v23 }
 0x8cb   : > { %v3757_v24 = vpop.eup %3756 }
 0x8cc   : > { %v2023_v25 = vsel %vm1571_vm5, %v3757_v24, 0.0 }
 0x8cd   : > { %v3759_v26 = vpop.eup %3758  ;;  %2024 = vadd.xlane.f32.xlu0 %v2023_v25 }
 0x8ce   : > { %v2026_v27 = vsel %vm1571_vm5, %v3759_v26, 0.0 }
 0x8cf   : > { %2027 = vadd.xlane.f32.xlu1 %v2026_v27 }
 0x8e0   : > { %2128 = vrot.lane.b32.xlu1 %v1466_v46, %s4072_s0 }
 0x8e3   : > { %2131 = vrot.lane.b32.xlu0 %v4662_v47, %s4072_s0 }
 0x8e4   : > { %2180 = vrot.lane.b32.xlu1 %v1468_v53, %s4072_s0 }
 0x95a   : > { %v2025_v29 = vpop.xlane.xlu0 %2024 }
 0x95b   : > { %3760 = vrcp.f32 %v2025_v29  ;;  %v3705_v29 = vld [vmem:[%s4469_s18] sm:$0xff]  }
 0x95c   : > { %v2028_v30 = vpop.xlane.xlu1 %2027 }
 0x95d   : > { %3762 = vrcp.f32 %v2028_v30  ;;  %v3706_v30 = vld [vmem:[%s4469_s18 + $0x48] sm:$0xff]  }
 0x95e   : > { %v2132_v34 = vpop.permute.xlu0 %2131 }
 0x95f   : > { %v2137_v38 = vsel %vm1371_vm2, %v2132_v34, 0  ;;  %v3710_v34 = vld [vmem:[%s4469_s18 + $0x58] sm:$0xff]  }
 0x960   : > { %v2129_v43 = vpop.permute.xlu1 %2128 }
 0x964   : > { %v2181_v44 = vpop.permute.xlu1 %2180 }
 0x965   : > { %v3761_v31 = vpop.eup %3760 }
 0x966   : > { %v2031_v32 = vmul.f32 %v3761_v31, %v3757_v24  ;;  %v3707_v31 = vld [vmem:[%s4469_s18 + $0x8] sm:$0xff]  }
 0x967   : > { %v3763_v33 = vpop.eup %3762 }
 0x968   : > { %v2032_v35 = vmul.f32 %v3763_v33, %v3759_v26  ;;  %v2033_v37 = vpack.c.bf16 %v2031_v32, %v2031_v32  ;;  %v3708_v32 = vld [vmem:[%s4469_s18 + $0x50] sm:$0xff]  }
 0x969   : > { %v3709_v33 = vld [vmem:[%s4469_s18 + $0x10] sm:$0xff]  }
 0x96a   : > { %3428 = vmatmul.mubr.msk.bf16.vlgmr.msra.gmra.mrb[16].mxu0 %vm1571_vm5, %v2033_v37  ;;  %v2034_v40 = vpack.c.bf16 %v2032_v35, %v2032_v35  ;;  %v3711_v35 = vld [vmem:[%s4469_s18 + $0x18] sm:$0xff]   ;;  %v3712_v37 = vld [vmem:[%s4469_s18 + $0x60] sm:$0xff]  }
 0x96b   : > { %3438 = vmatpush3.bf16.xpose.msra.mxu0 %v2137_v38  ;;  %3439 = vmatprep.mubr.msk.bf16.mxu0 %vm4070_vm3, %v4069_v36  ;;  %v3713_v38 = vld [vmem:[%s4469_s18 + $0x20] sm:$0xff]  }
 0x96c   : > { %3434 = vmatmul.mubr.msk.bf16.vlgmr.msra.gmra.mrb[40].mxu1 %vm1571_vm5, %v2034_v40  ;;  %3449 = vmatprep.subr.bf16.mxu0 %v4069_v36  ;;  %v3714_v40 = vld [vmem:[%s4469_s18 + $0x68] sm:$0xff]  }
 0x96d   : > { %3444 = vmatpush3.bf16.xpose.msra.mxu1 %v2189_v42  ;;  %3445 = vmatprep.mubr.msk.bf16.mxu1 %vm4070_vm3, %v4069_v36  ;;  %v3715_v42 = vld [vmem:[%s4469_s18 + $0x28] sm:$0xff]  }
 0x96e   : > { %3455 = vmatprep.subr.bf16.mxu1 %v4069_v36 }
 0x972   : > { %3440 = vmatmul.mubr.msk.bf16.vlgmr.msra.gmra.mrb[20].mxu0 %vm1371_vm2, %v2129_v43  ;;  %v3716_v43 = vld [vmem:[%s4469_s18 + $0x70] sm:$0xff]  }
 0x973   : > { %3451 = vmatprep.mubr.msk.bf16.mxu0 %vm4070_vm3, %v4069_v36 }
 0x974   : > { %3446 = vmatmul.mubr.msk.bf16.vlgmr.msra.gmra.mrb[44].mxu1 %vm1371_vm2, %v2181_v44  ;;  %v3717_v44 = vld [vmem:[%s4469_s18 + $0x30] sm:$0xff]  }
 0x975   : > { %3457 = vmatprep.mubr.msk.bf16.mxu1 %vm4070_vm3, %v4069_v36 }
 0xa3d   : > { %v4731_v45 = vpop.f32.mrb[16].mxu0 }
 0xa3e   : > { %v3429_v47 = vpop.f32.mrb[17].mxu0 }
 0xa3f   : > { %v2078_v15 = vpop.f32.mrb[18].mxu0  ;;  %v4733_v48 = vpop.f32.mrb[40].mxu1  ;;  %v3718_v47 = vld [vmem:[%s4469_s18 + $0x78] sm:$0xff]  }
 0xa40   : > { %v3430_v49 = vpop.f32.mrb[19].mxu0  ;;  %v3435_v50 = vpop.f32.mrb[41].mxu1  ;;  %v3719_v15 = vld [vmem:[%s4469_s18 + $0x38] sm:$0xff]  }
 0xa41   : > { %v2124_v51 = vpop.f32.mrb[42].mxu1 }
 0xa42   : > { %v3436_v52 = vpop.f32.mrb[43].mxu1 }
 0xa45   : > { %v2173_v46 = vpop.f32.mrb[20].mxu0 }
 0xa46   : > { %v2231_v53 = vmul.f32 0.125, %v2173_v46  ;;  %v3441_v54 = vpop.f32.mrb[21].mxu0 }
 0xa47   : > { %v2176_v14 = vpop.f32.mrb[22].mxu0  ;;  %v2225_v10 = vpop.f32.mrb[44].mxu1 }
 0xa48   : > { %v2232_v17 = vmul.f32 0.125, %v2225_v10  ;;  %v3442_v55 = vpop.f32.mrb[23].mxu0  ;;  %v3447_v58 = vpop.f32.mrb[45].mxu1  ;;  %v2233_v59 = vsel %vm1571_vm5, %v2231_v53, -inf }
 0xa49   : > { %2234 = vmax.xlane.f32.xlu0 %v2233_v59  ;;  %v2228_v60 = vpop.f32.mrb[46].mxu1 }
 0xa4a   : > { %v3448_v62 = vpop.f32.mrb[47].mxu1  ;;  %v2236_v63 = vsel %vm1571_vm5, %v2232_v17, -inf }
 0xa4b   : > { %2237 = vmax.xlane.f32.xlu1 %v2236_v63 }
 0xa5c   : > { %2307 = vrot.lane.b32.xlu1 %v4684_v39, %s4072_s0 }
 0xad6   : > { %v2235_v0 = vpop.xlane.xlu0 %2234 }
 0xad7   : > { %v2239_v2 = vsub.f32 %v2231_v53, %v2235_v0 }
 0xad8   : > { %v2238_v3 = vpop.xlane.xlu1 %2237 }
 0xad9   : > { %v2241_v5 = vmul.f32 1.442695, %v2239_v2  ;;  %v2240_v7 = vsub.f32 %v2232_v17, %v2238_v3 }
 0xadb   : > { %3764 = vpow2.f32 %v2241_v5  ;;  %v2243_v9 = vmul.f32 1.442695, %v2240_v7 }
 0xadc   : > { %v2308_v11 = vpop.permute.xlu1 %2307 }
 0xadd   : > { %3766 = vpow2.f32 %v2243_v9  ;;  %v2313_v12 = vsel %vm1599_vm4, %v2308_v11, 0  ;;  %v3260_v9 = vld [vmem:[%s827_s28] ss:$0 sm:$0xff] }
 0xade   : > { %3456 = vmatpush3.bf16.msra.mxu1 %v2313_v12 }
 0xadf   : > { %3461 = vmatprep.subr.bf16.mxu1 %v4069_v36 }
 0xae5   : > { %v3765_v13 = vpop.eup %3764 }
 0xae6   : > { %v2245_v16 = vsel %vm1571_vm5, %v3765_v13, 0.0 }
 0xae7   : > { %v3767_v18 = vpop.eup %3766  ;;  %2246 = vadd.xlane.f32.xlu0 %v2245_v16  ;;  %v3720_v16 = vld [vmem:[%s4475_s17] sm:$0xff]  }
 0xae8   : > { %v2248_v39 = vsel %vm1571_vm5, %v3767_v18, 0.0 }
 0xaeb   : > { %2249 = vadd.xlane.f32.xlu0 %v2248_v39 }
 0xb01   : > { %2258 = vrot.lane.b32.xlu0 %v4677_v41, %s4072_s0 }
 0xb74   : > { %v2247_v19 = vpop.xlane.xlu0 %2246 }
 0xb75   : > { %3768 = vrcp.f32 %v2247_v19 }
 0xb78   : > { %v2250_v20 = vpop.xlane.xlu0 %2249 }
 0xb79   : > { %3770 = vrcp.f32 %v2250_v20 }
 0xb7c   : > { %v2259_v21 = vpop.permute.xlu0 %2258 }
 0xb7d   : > { %v2264_v22 = vsel %vm1599_vm4, %v2259_v21, 0 }
 0xb7e   : > { %3450 = vmatpush3.bf16.msra.mxu0 %v2264_v22 }
 0xb7f   : > { %v3769_v23 = vpop.eup %3768  ;;  %3325 = vmatprep.subr.bf16.mxu0 %v3704_v28  ;;  %v3727_v28 = vld [vmem:[%s4475_s17 + $0x38] sm:$0xff]  }
 0xb80   : > { %v2253_v24 = vmul.f32 %v3769_v23, %v3765_v13  ;;  %v3721_v23 = vld [vmem:[%s4475_s17 + $0x8] sm:$0xff]  }
 0xb82   : > { %v2255_v25 = vpack.c.bf16 %v2253_v24, %v2253_v24  ;;  %v3722_v24 = vld [vmem:[%s4475_s17 + $0x10] sm:$0xff]  }
 0xb83   : > { %v3771_v26 = vpop.eup %3770 }
 0xb84   : > { %v2254_v27 = vmul.f32 %v3771_v26, %v3767_v18  ;;  %3452 = vmatmul.mubr.msk.bf16.vlgmr.msra.gmra.mrb[24].mxu0 %vm1571_vm5, %v2255_v25  ;;  %v3723_v25 = vld [vmem:[%s4475_s17 + $0x18] sm:$0xff]   ;;  %v3724_v26 = vld [vmem:[%s4475_s17 + $0x20] sm:$0xff]  }
 0xb85   : > { %3326 = vmatpush3.bf16.msra.mxu0 %v3705_v29 }
 0xb86   : > { %v2256_v41 = vpack.c.bf16 %v2254_v27, %v2254_v27  ;;  %3327 = vmatprep.subr.bf16.mxu0 %v3706_v30  ;;  %v3725_v27 = vld [vmem:[%s4475_s17 + $0x28] sm:$0xff]  }
 0xb88   : > { %3458 = vmatmul.mubr.msk.bf16.vlgmr.msra.gmra.mrb[48].mxu1 %vm1571_vm5, %v2256_v41  ;;  %v3726_v41 = vld [vmem:[%s4475_s17 + $0x30] sm:$0xff]  }
 0xb89   : > { %3477 = vmatprep.mubr.msk.bf16.mxu1 %vm4070_vm3, %v4069_v36  ;;  %3328 = vmatpush3.bf16.msra.mxu0 %v3707_v31 }
 0xb8a   : > { %3329 = vmatprep.subr.bf16.mxu0 %v3708_v32  ;;  %3462 = vmatpush3.bf16.msra.mxu1 %v3720_v16 }
 0xb8b   : > { %3463 = vmatprep.subr.bf16.mxu1 %v4069_v36 }
 0xb8d   : > { %3330 = vmatpush3.bf16.msra.mxu0 %v3709_v33 }
 0xb8e   : > { %3331 = vmatprep.subr.bf16.mxu0 %v3710_v34  ;;  %3464 = vmatpush3.bf16.msra.mxu1 %v3721_v23 }
 0xb8f   : > { %3465 = vmatprep.subr.bf16.mxu1 %v4069_v36 }
 0xb91   : > { %3332 = vmatpush3.bf16.msra.mxu0 %v3711_v35 }
 0xb92   : > { %3333 = vmatprep.subr.bf16.mxu0 %v3712_v37  ;;  %3466 = vmatpush3.bf16.msra.mxu1 %v3722_v24 }
 0xb93   : > { %3467 = vmatprep.subr.bf16.mxu1 %v4069_v36 }
 0xb95   : > { %3334 = vmatpush3.bf16.msra.mxu0 %v3713_v38  ;;  %v3261_v38 = vld [vmem:[%s830_s14] ss:$0 sm:$0xff] }
 0xb96   : > { %3335 = vmatprep.subr.bf16.mxu0 %v3714_v40  ;;  %3468 = vmatpush3.bf16.msra.mxu1 %v3723_v25 }
 0xb97   : > { %3469 = vmatprep.subr.bf16.mxu1 %v4069_v36 }
 0xb99   : > { %3336 = vmatpush3.bf16.msra.mxu0 %v3715_v42 }
 0xb9a   : > { %3337 = vmatprep.subr.bf16.mxu0 %v3716_v43  ;;  %3470 = vmatpush3.bf16.msra.mxu1 %v3724_v26 }
 0xb9b   : > { %3471 = vmatprep.subr.bf16.mxu1 %v4069_v36 }
 0xb9d   : > { %3338 = vmatpush3.bf16.msra.mxu0 %v3717_v44  ;;  %v3262_v44 = vld [vmem:[%s833_s25] ss:$0 sm:$0xff] }
 0xb9e   : > { %3339 = vmatprep.subr.bf16.mxu0 %v3718_v47  ;;  %3472 = vmatpush3.bf16.msra.mxu1 %v3725_v27 }
 0xb9f   : > { %3473 = vmatprep.subr.bf16.mxu1 %v4069_v36 }
 0xba1   : > { %3340 = vmatpush3.bf16.msra.mxu0 %v3719_v15 }
 0xba2   : > { %3481 = vmatprep.subr.bf16.mxu0 %v4069_v36  ;;  %3474 = vmatpush3.bf16.msra.mxu1 %v3726_v41 }
 0xba3   : > { %3475 = vmatprep.subr.bf16.mxu1 %v4069_v36 }
 0xba6   : > { %3476 = vmatpush3.bf16.msra.mxu1 %v3727_v28 }
 0xc57   : > { %v2300_v49 = vpop.f32.mrb[24].mxu0 }
 0xc58   : > { %v3453_v50 = vpop.f32.mrb[25].mxu0 }
 0xc59   : > { %v2303_v51 = vpop.f32.mrb[26].mxu0 }
 0xc5a   : > { %v3454_v52 = vpop.f32.mrb[27].mxu0  ;;  %v3728_v51 = vld [vmem:[%s4477_s7] sm:$0xff]  }
 0xc5b   : > { %v2349_v46 = vpop.f32.mrb[48].mxu1  ;;  %v3729_v52 = vld [vmem:[%s4477_s7 + $0x8] sm:$0xff]  }
 0xc5c   : > { %v3610_v53 = vpack.i.bf16 %v2349_v46, %v2300_v49  ;;  %v3459_v54 = vpop.f32.mrb[49].mxu1  ;;  %v3730_v46 = vld [vmem:[%s4477_s7 + $0x10] sm:$0xff]  }
 0xc5d   : > { %v2352_v14 = vpop.f32.mrb[50].mxu1  ;;  %v3732_v54 = vld [vmem:[%s4477_s7 + $0x20] sm:$0xff]  }
 0xc5e   : > { %3611 = vrot.lane.b32.xlu1 %v3610_v53, %s4072_s0  ;;  %v3460_v10 = vpop.f32.mrb[51].mxu1  ;;  %v3731_v53 = vld [vmem:[%s4477_s7 + $0x18] sm:$0xff]   ;;  %v3733_v14 = vld [vmem:[%s4477_s7 + $0x28] sm:$0xff]  }
 0xc5f   : > { %v3734_v10 = vld [vmem:[%s4477_s7 + $0x30] sm:$0xff]  }
 0xc62   : > { %3616 = vrot.lane.b32.xlu1 %v3615_v57, %s4072_s0 }
 0xcd0   : > { %v3612_v17 = vpop.permute.xlu1 %3611 }
 0xcd1   : > { %v3614_v55 = vunpack.i.h.bf16 %v3612_v17  ;;  %v3613_v58 = vunpack.i.l.bf16 %v3612_v17  ;;  %v3735_v17 = vld [vmem:[%s4477_s7 + $0x38] sm:$0xff]  }
 0xcd3   : > { %v2373_v59 = vsel %vm1371_vm2, %v4731_v45, %v3613_v58  ;;  %v2374_v60 = vsel %vm1371_vm2, %v4733_v48, %v3614_v55  ;;  %v3263_v55 = vld [vmem:[%s836_s1] ss:$0 sm:$0xff] }
 0xcd4   : > { %v3617_v62 = vpop.permute.xlu1 %3616  ;;  %v2376_v63 = vpack.c.bf16 %v2374_v60, %v2373_v59 }
 0xcd5   : > { %v3619_v0 = vunpack.i.h.bf16 %v3617_v62  ;;  %v3618_v2 = vunpack.i.l.bf16 %v3617_v62 }
 0xcd6   : > { %2537 = vmatprep.mubr.bf16.mxu0 %v2376_v63 }
 0xcd7   : > { %v2372_v3 = vsel %vm1371_vm2, %v4646_v1, %v3619_v0  ;;  %v2371_v8 = vsel %vm1371_vm2, %v4644_v61, %v3618_v2 }
 0xcd8   : > { %v2375_v56 = vpack.c.bf16 %v2372_v3, %v2371_v8 }
 0xcda   : > { %2538 = vmatmul.mubr.bf16.vlgmr.msra.gmra.mrb[28].mxu0 %v2375_v56 }
 0xcdb   : > { %3497 = vmatprep.mubr.msk.bf16.mxu0 %vm4070_vm3, %v4069_v36  ;;  %3482 = vmatpush3.bf16.msra.mxu0 %v3728_v51 }
 0xcdc   : > { %3483 = vmatprep.subr.bf16.mxu0 %v4069_v36 }
 0xcdf   : > { %3484 = vmatpush3.bf16.msra.mxu0 %v3729_v52 }
 0xce0   : > { %3485 = vmatprep.subr.bf16.mxu0 %v4069_v36 }
 0xce3   : > { %3486 = vmatpush3.bf16.msra.mxu0 %v3730_v46 }
 0xce4   : > { %3487 = vmatprep.subr.bf16.mxu0 %v4069_v36 }
 0xce7   : > { %3488 = vmatpush3.bf16.msra.mxu0 %v3731_v53 }
 0xce8   : > { %3489 = vmatprep.subr.bf16.mxu0 %v4069_v36 }
 0xceb   : > { %3490 = vmatpush3.bf16.msra.mxu0 %v3732_v54 }
 0xcec   : > { %3491 = vmatprep.subr.bf16.mxu0 %v4069_v36 }
 0xcef   : > { %3492 = vmatpush3.bf16.msra.mxu0 %v3733_v14 }
 0xcf0   : > { %3493 = vmatprep.subr.bf16.mxu0 %v4069_v36 }
 0xcf3   : > { %3494 = vmatpush3.bf16.msra.mxu0 %v3734_v10 }
 0xcf4   : > { %3495 = vmatprep.subr.bf16.mxu0 %v4069_v36 }
 0xcf7   : > { %3496 = vmatpush3.bf16.msra.mxu0 %v3735_v17 }
 0xdad   : > { %v3341_v57 = vpop.f32.mrb[28].mxu0 }
 0xdae   : > { %v3342_v45 = vpop.f32.mrb[29].mxu0 }
 0xdaf   : > { %v3343_v48 = vadd.f32 %v3342_v45, %v3341_v57  ;;  %v3344_v5 = vpop.f32.mrb[30].mxu0 }
 0xdb0   : > { %v3345_v7 = vpop.f32.mrb[31].mxu0 }
 0xdb1   : > { %v2546_v1 = vadd.f32 %v3343_v48, %v4484_v4  ;;  %v3346_v11 = vadd.f32 %v3345_v7, %v3344_v5 }
 0xdb3   : > { %v2547_v61 = vadd.f32 %v3346_v11, %v4487_v6  ;;  %v4788_v12 = vadd.f32 %v3260_v9, %v2546_v1 }
 0xdb5   : > { %2559 = vadd.xlane.f32.xlu0 %v4788_v12  ;;  %v4791_v13 = vadd.f32 %v3260_v9, %v2547_v61 }
 0xdb7   : > { %2561 = vadd.xlane.f32.xlu1 %v4791_v13 }
 0xe42   : > { %v2560_v18 = vpop.xlane.xlu0 %2559 }
 0xe43   : > { %v2563_v4 = vmul.f32 0.0078125, %v2560_v18 }
 0xe44   : > { %v2562_v39 = vpop.xlane.xlu1 %2561 }
 0xe45   : > { %v2565_v6 = vsub.f32 %v4788_v12, %v2563_v4  ;;  %v2564_v19 = vmul.f32 0.0078125, %v2562_v39 }
 0xe47   : > { %v2566_v20 = vsub.f32 %v4791_v13, %v2564_v19  ;;  %v2567_v21 = vmul.f32 %v2565_v6, %v2565_v6 }
 0xe49   : > { %2569 = vadd.xlane.f32.xlu0 %v2567_v21  ;;  %v2568_v22 = vmul.f32 %v2566_v20, %v2566_v20 }
 0xe4d   : > { %2571 = vadd.xlane.f32.xlu0 %v2568_v22 }
 0xed6   : > { %v2570_v29 = vpop.xlane.xlu0 %2569 }
 0xed7   : > { %v2573_v30 = vmul.f32 0.0078125, %v2570_v29 }
 0xed9   : > { %v2575_v31 = vadd.f32 1e-05, %v2573_v30 }
 0xeda   : > { %v2572_v32 = vpop.xlane.xlu0 %2571 }
 0xedb   : > { %3772 = vrsqrt.f32 %v2575_v31  ;;  %v2574_v33 = vmul.f32 0.0078125, %v2572_v32 }
 0xedd   : > { %v2576_v34 = vadd.f32 1e-05, %v2574_v33 }
 0xedf   : > { %3774 = vrsqrt.f32 %v2576_v34 }
 0xee5   : > { %v3773_v35 = vpop.eup %3772 }
 0xee6   : > { %v2579_v37 = vmul.f32 %v3773_v35, %v2565_v6 }
 0xee8   : > { %v2587_v43 = vmul.f32 %v3261_v38, %v2579_v37 }
 0xee9   : > { %v3775_v40 = vpop.eup %3774 }
 0xeea   : > { %v2580_v42 = vmul.f32 %v3775_v40, %v2566_v20  ;;  %v2595_v15 = vadd.f32 %v3262_v44, %v2587_v43  ;;  %v3280_v20 = vld [vmem:[%s839_s20] ss:$0 sm:$0xff] }
 0xeec   : > { %v2588_v47 = vmul.f32 %v3261_v38, %v2580_v42 }
 0xeee   : > { %v2596_v49 = vadd.f32 %v3262_v44, %v2588_v47 }
 0xef0   : > { %v2597_v50 = vpack.c.bf16 %v2596_v49, %v2595_v15 }
 0xef2   : > { %3478 = vmatmul.mubr.bf16.vlgmr.msra.gmra.mrb[52].mxu1 %v2597_v50 }
 0xfc5   : > { %v2703_v58 = vpop.f32.mrb[52].mxu1 }
 0xfc6   : > { %v2704_v59 = vadd.f32 %v3263_v55, %v2703_v58  ;;  %v3479_v60 = vpop.f32.mrb[53].mxu1 }
 0xfc7   : > { %v2706_v62 = vpop.f32.mrb[54].mxu1 }
 0xfc8   : > { %v2712_v63 = vmul.f32 0.044715, %v2704_v59  ;;  %v2707_v0 = vadd.f32 %v3263_v55, %v2706_v62  ;;  %v3480_v2 = vpop.f32.mrb[55].mxu1  ;;  %v2710_v61 = vmul.f32 0.5, %v2704_v59 }
 0xfca   : > { %v2714_v3 = vmul.f32 %v2712_v63, %v2704_v59  ;;  %v2713_v8 = vmul.f32 0.044715, %v2707_v0  ;;  %v2711_v16 = vmul.f32 0.5, %v2707_v0 }
 0xfcc   : > { %v2716_v56 = vmul.f32 %v2714_v3, %v2704_v59  ;;  %v2715_v57 = vmul.f32 %v2713_v8, %v2707_v0 }
 0xfce   : > { %v2718_v45 = vadd.f32 %v2716_v56, %v2704_v59  ;;  %v2717_v48 = vmul.f32 %v2715_v57, %v2707_v0 }
 0xfd0   : > { %v2720_v36 = vmul.f32 0.7978846, %v2718_v45  ;;  %v2719_v5 = vadd.f32 %v2717_v48, %v2707_v0 }
 0xfd2   : > { %3776 = vtanh.f32 %v2720_v36  ;;  %v2721_v7 = vmul.f32 0.7978846, %v2719_v5 }
 0xfd4   : > { %3778 = vtanh.f32 %v2721_v7 }
 0xfdc   : > { %v3777_v9 = vpop.eup %3776 }
 0xfdd   : > { %v2724_v1 = vadd.f32 1.0, %v3777_v9 }
 0xfde   : > { %v3779_v11 = vpop.eup %3778 }
 0xfdf   : > { %v2725_v18 = vadd.f32 1.0, %v3779_v11  ;;  %v2726_v4 = vmul.f32 %v2724_v1, %v2710_v61 }
 0xfe1   : > { %v2727_v39 = vmul.f32 %v2725_v18, %v2711_v16 }
 0xfe3   : > { %v2728_v6 = vpack.c.bf16 %v2727_v39, %v2726_v4 }
 0xfe5   : > { %3498 = vmatmul.mubr.bf16.vlgmr.msra.gmra.mrb[32].mxu0 %v2728_v6 }
0x10b7   : > { %2848 = sbr.rel (%p3281_p10) target bundleno = 4288 (0x10c0), region = 112 }
0x10b8   : > { %v2827_v19 = vpop.f32.mrb[32].mxu0 }
0x10b9   : > { %v2834_v21 = vadd.f32 %v2827_v19, %v4788_v12  ;;  %v3499_v22 = vpop.f32.mrb[33].mxu0 }
0x10ba   : > { %v2830_v23 = vpop.f32.mrb[34].mxu0 }
0x10bb   : > { %v2843_v24 = vadd.f32 %v3280_v20, %v2834_v21  ;;  %v2835_v25 = vadd.f32 %v2830_v23, %v4791_v13  ;;  %v3500_v26 = vpop.f32.mrb[35].mxu0 }
0x10bd   : > { %v2844_v27 = vadd.f32 %v3280_v20, %v2835_v25  ;;  %2849 = vst [vmem:[#allocation13] sm:$0xff] (!%p3281_p10), %v2843_v24 }
0x10bf   : > { %2850 = vst [vmem:[#allocation13 + $0x8] sm:$0xff] %v2844_v27 }
0x10c0 PF: > { %p3282_p13 = scmp.ne.s32.totalorder %s4046_s24, 1 }
0x10c1   : > { %2857 = vadd.xlane.f32.xlu0 (!%p3282_p13), %v2843_v24  ;;  %s4971_s0 = sld [smem:[#allocation34_spill]] (!%p3282_p13)  ;;  %s4972_s8 = sld [smem:[#allocation35_spill]] (!%p3282_p13) }
0x10c2   : > { %2854 = sbr.rel (%p3282_p13) target bundleno = 4605 (0x11fd), region = 116 }
0x10c5   : > { %2859 = vadd.xlane.f32.xlu0 (!%p3282_p13), %v2844_v27 }
0x10c7   : > { %v3283_v43 = vld [vmem:[%s4971_s0] ss:$0 sm:$0xff] (!%p3282_p13) }
0x10c8   : > { %v3284_v47 = vld [vmem:[%s4972_s8] ss:$0 sm:$0xff] (!%p3282_p13) }
0x114e   : > { %v2858_v41 = vpop.xlane.xlu0 %2857 }
0x114f   : > { %v2861_v12 = vmul.f32 0.0078125, %v2858_v41 }
0x1151   : > { %v2863_v28 = vsub.f32 %v2843_v24, %v2861_v12 }
0x1152   : > { %v2860_v29 = vpop.xlane.xlu0 %2859 }
0x1153   : > { %v2862_v30 = vmul.f32 0.0078125, %v2860_v29  ;;  %v2865_v31 = vmul.f32 %v2863_v28, %v2863_v28 }
0x1155   : > { %v2864_v13 = vsub.f32 %v2844_v27, %v2862_v30  ;;  %2867 = vadd.xlane.f32.xlu1 %v2865_v31 }
0x1157   : > { %v2866_v32 = vmul.f32 %v2864_v13, %v2864_v13 }
0x1159   : > { %2869 = vadd.xlane.f32.xlu1 %v2866_v32 }
0x11e2   : > { %v2868_v33 = vpop.xlane.xlu1 %2867 }
0x11e3   : > { %v2871_v34 = vmul.f32 0.0078125, %v2868_v33 }
0x11e5   : > { %v2873_v35 = vadd.f32 1e-05, %v2871_v34 }
0x11e6   : > { %v2870_v37 = vpop.xlane.xlu1 %2869 }
0x11e7   : > { %3780 = vrsqrt.f32 %v2873_v35  ;;  %v2872_v38 = vmul.f32 0.0078125, %v2870_v37 }
0x11e9   : > { %v2874_v40 = vadd.f32 1e-05, %v2872_v38 }
0x11eb   : > { %3782 = vrsqrt.f32 %v2874_v40 }
0x11f1   : > { %v3781_v42 = vpop.eup %3780 }
0x11f2   : > { %v2877_v44 = vmul.f32 %v3781_v42, %v2863_v28 }
0x11f4   : > { %v2885_v15 = vmul.f32 %v3283_v43, %v2877_v44 }
0x11f5   : > { %v3783_v49 = vpop.eup %3782 }
0x11f6   : > { %v2893_v50 = vadd.f32 %v3284_v47, %v2885_v15  ;;  %v2878_v51 = vmul.f32 %v3783_v49, %v2864_v13 }
0x11f8   : > { %2895 = vst [vmem:[#allocation13] sm:$0xff] %v2893_v50  ;;  %v2886_v52 = vmul.f32 %v3283_v43, %v2878_v51 }
0x11fa   : > { %v2894_v46 = vadd.f32 %v3284_v47, %v2886_v52 }
0x11fc   : > { %2896 = vst [vmem:[#allocation13 + $0x8] sm:$0xff] %v2894_v46 }
0x11fd PF: > { %p3545_p2 = scmp.eq.s32.totalorder %s4292_s15, 1  ;;  %s4073_s28 = smov [#allocation13]  }
0x11fe   : > { %s2906_s18 = sshll.u32 %s4073_s28, 4  ;;  %s2907_s18 = int_to_ptr.vmem [resolvable:$true] %s2906_s18 }
0x11ff   : > { %s3962_s13 = scalar_lea.vmem %s2907_s18, 256  ;;  %p3969_p5 = scmp.lt.s32.totalorder %s2907_s18, %s2907_s18 }
0x1200   : > { %p3963_p0 = scmp.ne.s32.totalorder %s2907_s18, %s3962_s13  ;;  %p3970_p11 = scmp.lt.s32.totalorder %s3962_s13, %s3962_s13 }
0x1202   : > { %p3964_p1 = pnand %p3963_p0, %p3545_p2  ;;  %p3971_p8 = por %p3970_p11, %p3969_p5 }
0x1204   : > { %p3965_p12 = pneg %p3964_p1 }
0x1206   : > { %p3972_p4 = pnand %p3971_p8, %p3965_p12 }
0x1208   : > { %3975 = shalt.err (!%p3972_p4)
}
0x1209   : > { %s4973_s17 = sld [smem:[#allocation36_spill]] }
0x120f   : > { %s3976_s29 = scalar_lea.hbm %s4973_s17, 256 }
0x1210   : > { %p3977_p6 = scmp.ne.s32.totalorder %s4973_s17, %s3976_s29  ;;  %p3982_p9 = scmp.lt.u32.totalorder %s3976_s29, %s4973_s17 }
0x1212   : > { %p3978_p3 = pnand %p3977_p6, %p3545_p2 }
0x1214   : > { %p3979_p7 = pneg %p3978_p3 }
0x1216   : > { %p3984_p10 = pnand %p3982_p9, %p3979_p7 }
0x1218   : > { %3987 = shalt.err (!%p3984_p10)
}
0x1219   : > { %s4074_s26 = smov 128   ;;  %s4075_s1 = smov 8  }
0x121a   : > { %3519 = dma.vmem_to_hbm [thread:$0]  (%p3545_p2), %s2907_s18, 256, %s4973_s17, [#allocation4], %s4074_s26, %s4074_s26, %s4075_s1  }
0x121b   : > { %4029 = dma.done.wait (%p3545_p2), [#allocation4], 256  }
0x121c   : > { %4031 = vsyncadd (%p3545_p2), [#allocation4], 4294967040 }
0x121d PF: > { %s4974_s11 = sld [smem:[#allocation21_spill]]  ;;  %s4975_s20 = sld [smem:[#allocation19_spill]] }
0x121e   : > { %s4976_s23 = sld [smem:[#allocation23_spill]]  ;;  %s4977_s24 = sld [smem:[#allocation20_spill]] }
0x121f   : > { %s4978_s25 = sld [smem:[#allocation22_spill]]  ;;  %s4979_s21 = smov %s4038_s22 }
0x1223   : > { %s37_s26 = sadd.s32 1, %s4974_s11   ;;  %s4980_s22 = smov %s4975_s20 }
0x1224   : > { %p34_p13 = scmp.ge.s32.totalorder %s37_s26, 4  }
0x1226   :  { %36 = sbr.rel (!%p34_p13) target bundleno = 24 (0x18), region = 208 }
0x122d   :  { %2922 = vsyncpa [#allocation3], 1 }
0x122e   :  { %2924 = vsyncpa [#allocation3 + $0x1], 1 }
0x122f   :  { %2925 = vsyncpa [#allocation6], 1 }
0x1230   :  { %2927 = vsyncpa [#allocation6 + $0x1], 1 }
0x1231   :  { %2928 = vsyncpa [#allocation9], 1 }
0x1232   :  { %2930 = vsyncpa [#allocation9 + $0x1], 1 }
0x1233   :  { %2931 = vsyncpa [#allocation12], 1 }
0x1234   :  { %2933 = vsyncpa [#allocation12 + $0x1], 1 }
0x1235   :  { %2934 = vsyncpa [#allocation4], 1 }
0x1236   :  { %2936 = vsyncpa [#allocation4 + $0x1], 1 }

</bundles_post_ra>
